<compile_context>
chip_gen: v7x
topology: tpu7x:2x2x1
jax: 0.10.0
libtpu: 0.0.40
codegen_flags: <defaults>
</compile_context>

<pallas_src>
import math

import jax
import jax.numpy as jnp
from jax.experimental import pallas as pl
from jax.experimental.pallas import tpu as pltpu

# ---------------- small ViT config (synthetic) ----------------
PATCH = 16
HIDDEN = 32
MLP_DIM = 64
HEADS = 4
HEAD_DIM = HIDDEN // HEADS
NUM_BLOCKS = 2
NUM_CLASSES = 10
LN_EPS = 1e-6

SUBLANE = 8
LANE = 128


def _round_up(x, m):
    return ((x + m - 1) // m) * m


# ---------------- in-kernel helpers ----------------
def _layernorm(x, g, b):
    mu = jnp.mean(x, axis=-1, keepdims=True)
    var = jnp.mean(jnp.square(x - mu), axis=-1, keepdims=True)
    return (x - mu) * jax.lax.rsqrt(var + LN_EPS) * g + b


def _erf(x):
    # Abramowitz & Stegun 7.1.26 (max abs error ~1.5e-7); elementwise-only so it
    # is guaranteed to lower in Mosaic.
    # TODO(synk): exact erf-GELU approximated to ~1.5e-7 abs error (vs torch's erf).
    a1, a2, a3, a4, a5 = 0.254829592, -0.284496736, 1.421413741, -1.453152027, 1.061405429
    p = 0.3275911
    s = jnp.where(x < 0.0, -1.0, 1.0)
    ax = jnp.abs(x)
    t = 1.0 / (1.0 + p * ax)
    poly = ((((a5 * t + a4) * t + a3) * t + a2) * t + a1) * t
    return s * (1.0 - poly * jnp.exp(-ax * ax))


def _gelu_exact(x):
    return 0.5 * x * (1.0 + _erf(x * 0.7071067811865475))


# ---------------- fully fused ViT forward kernel ----------------
def _vit_fused_kernel(
    patches_ref, conv_w_ref, seqinit_ref, attn_bias_ref,
    ln1g_ref, ln1b_ref, wqkv_ref, bqkv_ref, wo_ref, bo_ref,
    ln2g_ref, ln2b_ref, w1_ref, b1_ref, w2_ref, b2_ref,
    lnfg_ref, lnfb_ref, headw_ref, headb_ref,
    o_ref,
):
    # ---- patch embedding: one (M, K) x (K, D) matmul.
    # conv bias / pos-embedding / class-token are pre-folded into seqinit.
    x = jnp.dot(patches_ref[...], conv_w_ref[...],
                preferred_element_type=jnp.float32) + seqinit_ref[...]       # (M, D)

    attn_bias = attn_bias_ref[...]            # (M, M): 0 valid, -1e30 masked (hoisted)
    scale = 1.0 / math.sqrt(HEAD_DIM)

    for blk in range(NUM_BLOCKS):             # static unroll over encoder blocks
        # ---------- attention sub-block ----------
        y = _layernorm(x, ln1g_ref[blk], ln1b_ref[blk])
        qkv = jnp.dot(y, wqkv_ref[blk],
                      preferred_element_type=jnp.float32) + bqkv_ref[blk]    # (M, 3D)

        heads = []
        for h in range(HEADS):                # static unroll over heads
            qh = qkv[:, h * HEAD_DIM:(h + 1) * HEAD_DIM]
            kh = qkv[:, HIDDEN + h * HEAD_DIM:HIDDEN + (h + 1) * HEAD_DIM]
            vh = qkv[:, 2 * HIDDEN + h * HEAD_DIM:2 * HIDDEN + (h + 1) * HEAD_DIM]
            # scores over the flattened batch; block-diag bias keeps images separate
            s = jax.lax.dot_general(qh, kh, (((1,), (1,)), ((), ())),
                                    preferred_element_type=jnp.float32) * scale
            s = s + attn_bias
            s = s - jnp.max(s, axis=-1, keepdims=True)
            p = jnp.exp(s)
            p = p / jnp.sum(p, axis=-1, keepdims=True)
            heads.append(jnp.dot(p, vh, preferred_element_type=jnp.float32))

        ctx = jnp.concatenate(heads, axis=-1)                                # (M, D)
        proj = jnp.dot(ctx, wo_ref[blk],
                       preferred_element_type=jnp.float32) + bo_ref[blk]
        x = x + proj

        # ---------- MLP sub-block ----------
        y2 = _layernorm(x, ln2g_ref[blk], ln2b_ref[blk])
        h1 = jnp.dot(y2, w1_ref[blk],
                     preferred_element_type=jnp.float32) + b1_ref[blk]
        h1 = _gelu_exact(h1)
        h2 = jnp.dot(h1, w2_ref[blk],
                     preferred_element_type=jnp.float32) + b2_ref[blk]
        x = x + h2

    # ---------- final LayerNorm + classifier on all rows (lane-dense store);
    # the class-token rows / real class columns are sliced out in the wrapper.
    yf = _layernorm(x, lnfg_ref[...], lnfb_ref[...])
    o_ref[...] = jnp.dot(yf, headw_ref[...],
                         preferred_element_type=jnp.float32) + headb_ref[...]


# ---------------- full forward (wrapper glue + one pallas_call) ----------------
_BLOCK_PARAM_NAMES = (
    "ln1_g", "ln1_b", "w_qkv", "b_qkv", "w_o", "b_o",
    "ln2_g", "ln2_b", "w_1", "b_1", "w_2", "b_2",
)


def vit_forward(x_img, params):
    N, C, H, W = x_img.shape
    gh, gw = H // PATCH, W // PATCH
    num_patches = gh * gw
    S_real = 1 + num_patches
    S_pad = _round_up(S_real, SUBLANE)
    M = N * S_pad
    K = C * PATCH * PATCH

    # _process_input: Conv2d(k=16, s=16) as a matmul over flattened patches
    # (C-major within each patch, matching Conv2d weight layout (D, C, P, P)).
    patches = x_img.reshape(N, C, gh, PATCH, gw, PATCH)
    patches = patches.transpose(0, 2, 4, 1, 3, 5).reshape(N, num_patches, K)
    # pad each image to S_pad rows: row 0 = class-token slot, tail rows = padding
    patches_padded = jnp.zeros((N, S_pad, K), jnp.float32)
    patches_padded = patches_padded.at[:, 1:S_real, :].set(patches)
    patches_padded = patches_padded.reshape(M, K)

    # seqinit folds class token, positional embedding and conv bias into one add.
    seqinit = jnp.zeros((S_pad, HIDDEN), jnp.float32)
    seqinit = seqinit.at[0].set(params["class_token"][0, 0] + params["pos_embedding"][0, 0])
    seqinit = seqinit.at[1:S_real].set(params["pos_embedding"][0, 1:] + params["conv_b"][0])
    seqinit_tiled = jnp.tile(seqinit, (N, 1))                                 # (M, D)

    # block-diagonal attention bias over the flattened batch:
    # valid iff same image AND key position is a real token.
    row = jnp.arange(M)[:, None]
    col = jnp.arange(M)[None, :]
    valid = (row // S_pad == col // S_pad) & ((col % S_pad) < S_real)
    attn_bias = jnp.where(valid, 0.0, -1e30).astype(jnp.float32)              # (M, M)

    # stack per-block params (leading NUM_BLOCKS axis, static-indexed in-kernel)
    stacked = {name: jnp.stack([bp[name] for bp in params["blocks"]], axis=0)
               for name in _BLOCK_PARAM_NAMES}

    # pad classifier to a lane-dense output width
    head_w = params["head_w"]
    C_out = head_w.shape[1]
    C_pad = _round_up(C_out, LANE)
    head_w_p = jnp.zeros((HIDDEN, C_pad), jnp.float32).at[:, :C_out].set(head_w)
    head_b_p = jnp.zeros((1, C_pad), jnp.float32).at[:, :C_out].set(params["head_b"])

    # advisory cost estimate for XLA scheduling
    flops = 2 * M * K * HIDDEN
    flops += NUM_BLOCKS * (
        2 * M * HIDDEN * 3 * HIDDEN
        + HEADS * 2 * (2 * M * M * HEAD_DIM)
        + 2 * M * HIDDEN * HIDDEN
        + 2 * M * HIDDEN * MLP_DIM + 2 * M * MLP_DIM * HIDDEN
    )
    flops += 2 * M * HIDDEN * C_pad
    transcendentals = NUM_BLOCKS * (HEADS * M * M + M * MLP_DIM)
    in_arrays = [patches_padded, params["conv_w"], seqinit_tiled, attn_bias,
                 *stacked.values(), params["ln_f_g"], params["ln_f_b"],
                 head_w_p, head_b_p]
    bytes_accessed = 4 * (sum(int(a.size) for a in in_arrays) + M * C_pad)

    out = pl.pallas_call(
        _vit_fused_kernel,
        out_shape=jax.ShapeDtypeStruct((M, C_pad), jnp.float32),
        cost_estimate=pl.CostEstimate(
            flops=int(flops),
            transcendentals=int(transcendentals),
            bytes_accessed=int(bytes_accessed),
        ),
    )(
        patches_padded, params["conv_w"], seqinit_tiled, attn_bias,
        stacked["ln1_g"], stacked["ln1_b"], stacked["w_qkv"], stacked["b_qkv"],
        stacked["w_o"], stacked["b_o"],
        stacked["ln2_g"], stacked["ln2_b"], stacked["w_1"], stacked["b_1"],
        stacked["w_2"], stacked["b_2"],
        params["ln_f_g"], params["ln_f_b"], head_w_p, head_b_p,
    )

    # classifier(x[:, 0]): take the class-token row of each image, real classes only
    return out.reshape(N, S_pad, C_pad)[:, 0, :C_out]


# ---------------- deterministic parameter init ----------------
def init_params(key, in_chans, num_patches):
    ks = iter(jax.random.split(key, 64))
    n01 = lambda shape, s=0.02: (s * jax.random.normal(next(ks), shape)).astype(jnp.float32)

    blocks = []
    for _ in range(NUM_BLOCKS):
        blocks.append({
            "ln1_g": jnp.ones((1, HIDDEN), jnp.float32),
            "ln1_b": jnp.zeros((1, HIDDEN), jnp.float32),
            "w_qkv": n01((HIDDEN, 3 * HIDDEN)),
            "b_qkv": jnp.zeros((1, 3 * HIDDEN), jnp.float32),
            "w_o": n01((HIDDEN, HIDDEN)),
            "b_o": jnp.zeros((1, HIDDEN), jnp.float32),
            "ln2_g": jnp.ones((1, HIDDEN), jnp.float32),
            "ln2_b": jnp.zeros((1, HIDDEN), jnp.float32),
            "w_1": n01((HIDDEN, MLP_DIM)),
            "b_1": jnp.zeros((1, MLP_DIM), jnp.float32),
            "w_2": n01((MLP_DIM, HIDDEN)),
            "b_2": jnp.zeros((1, HIDDEN), jnp.float32),
        })

    return {
        # NOTE: weights stored as (in, out) and applied as x @ W; PyTorch Linear
        # weights (out, in) must be transposed if imported.
        "conv_w": n01((in_chans * PATCH * PATCH, HIDDEN)),
        "conv_b": jnp.zeros((1, HIDDEN), jnp.float32),
        "class_token": n01((1, 1, HIDDEN)),
        "pos_embedding": n01((1, 1 + num_patches, HIDDEN)),
        "blocks": blocks,
        "ln_f_g": jnp.ones((1, HIDDEN), jnp.float32),
        "ln_f_b": jnp.zeros((1, HIDDEN), jnp.float32),
        "head_w": n01((HIDDEN, NUM_CLASSES)),
        "head_b": jnp.zeros((1, NUM_CLASSES), jnp.float32),
    }


if __name__ == "__main__":
    key = jax.random.PRNGKey(0)
    k_img, k_par = jax.random.split(key)

    N, C, H, W = 2, 3, 32, 32          # small but patch-compatible image
    x_img = jax.random.normal(k_img, (N, C, H, W), dtype=jnp.float32)
    num_patches = (H // PATCH) * (W // PATCH)
    params = init_params(k_par, C, num_patches)

    logits = vit_forward(x_img, params)
    logits = jax.block_until_ready(logits)
    assert logits.shape == (N, NUM_CLASSES)
    assert bool(jnp.all(jnp.isfinite(logits)))
    print("KERNEL_OK")
</pallas_src>

<mosaic_0001>
module attributes {stable_mosaic.version = 11 : i64} {
  func.func @_vit_fused_kernel(%arg0: memref<16x768xf32, #tpu.memory_space<vmem>>, %arg1: memref<768x32xf32, #tpu.memory_space<vmem>>, %arg2: memref<16x32xf32, #tpu.memory_space<vmem>>, %arg3: memref<16x16xf32, #tpu.memory_space<vmem>>, %arg4: memref<2x1x32xf32, #tpu.memory_space<vmem>>, %arg5: memref<2x1x32xf32, #tpu.memory_space<vmem>>, %arg6: memref<2x32x96xf32, #tpu.memory_space<vmem>>, %arg7: memref<2x1x96xf32, #tpu.memory_space<vmem>>, %arg8: memref<2x32x32xf32, #tpu.memory_space<vmem>>, %arg9: memref<2x1x32xf32, #tpu.memory_space<vmem>>, %arg10: memref<2x1x32xf32, #tpu.memory_space<vmem>>, %arg11: memref<2x1x32xf32, #tpu.memory_space<vmem>>, %arg12: memref<2x32x64xf32, #tpu.memory_space<vmem>>, %arg13: memref<2x1x64xf32, #tpu.memory_space<vmem>>, %arg14: memref<2x64x32xf32, #tpu.memory_space<vmem>>, %arg15: memref<2x1x32xf32, #tpu.memory_space<vmem>>, %arg16: memref<1x32xf32, #tpu.memory_space<vmem>>, %arg17: memref<1x32xf32, #tpu.memory_space<vmem>>, %arg18: memref<32x128xf32, #tpu.memory_space<vmem>>, %arg19: memref<1x128xf32, #tpu.memory_space<vmem>>, %arg20: memref<16x128xf32, #tpu.memory_space<vmem>>) attributes {dimension_semantics = [], scalar_prefetch = 0 : i64, scratch_operands = 0 : i64, tpu.core_type = #tpu.core_type<tc>} {
    %c0 = arith.constant 0 : index
    %c0_0 = arith.constant 0 : index
    %0 = vector.load %arg0[%c0, %c0_0] : memref<16x768xf32, #tpu.memory_space<vmem>>, vector<16x768xf32>
    %c0_1 = arith.constant 0 : index
    %c0_2 = arith.constant 0 : index
    %1 = vector.load %arg1[%c0_1, %c0_2] : memref<768x32xf32, #tpu.memory_space<vmem>>, vector<768x32xf32>
    %cst = arith.constant dense<0.000000e+00> : vector<16x32xf32>
    %2 = tpu.matmul %0, %1, %cst {dimension_numbers = #tpu.dot_dimension_numbers<[1], [0], [0], [1], [0, 0, 1, 1], [], []>} : vector<16x768xf32>, vector<768x32xf32>, vector<16x32xf32> -> vector<16x32xf32>
    %c0_3 = arith.constant 0 : index
    %c0_4 = arith.constant 0 : index
    %3 = vector.load %arg2[%c0_3, %c0_4] : memref<16x32xf32, #tpu.memory_space<vmem>>, vector<16x32xf32>
    %4 = arith.addf %2, %3 : vector<16x32xf32>
    %c0_5 = arith.constant 0 : index
    %c0_6 = arith.constant 0 : index
    %5 = vector.load %arg3[%c0_5, %c0_6] : memref<16x16xf32, #tpu.memory_space<vmem>>, vector<16x16xf32>
    %c0_7 = arith.constant 0 : index
    %c0_8 = arith.constant 0 : index
    %c0_9 = arith.constant 0 : index
    %6 = vector.load %arg4[%c0_7, %c0_8, %c0_9] : memref<2x1x32xf32, #tpu.memory_space<vmem>>, vector<1x1x32xf32>
    %7 = vector.shape_cast %6 : vector<1x1x32xf32> to vector<1x32xf32>
    %c0_10 = arith.constant 0 : index
    %c0_11 = arith.constant 0 : index
    %c0_12 = arith.constant 0 : index
    %8 = vector.load %arg5[%c0_10, %c0_11, %c0_12] : memref<2x1x32xf32, #tpu.memory_space<vmem>>, vector<1x1x32xf32>
    %9 = vector.shape_cast %8 : vector<1x1x32xf32> to vector<1x32xf32>
    %cst_13 = arith.constant dense<0.000000e+00> : vector<16xf32>
    %10 = vector.multi_reduction <add>, %4, %cst_13 [1] : vector<16x32xf32> to vector<16xf32>
    %11 = vector.shape_cast %10 : vector<16xf32> to vector<16x1xf32>
    %cst_14 = arith.constant 3.200000e+01 : f32
    %12 = vector.broadcast %cst_14 : f32 to vector<16x1xf32>
    %13 = arith.divf %11, %12 : vector<16x1xf32>
    %14 = vector.broadcast %13 : vector<16x1xf32> to vector<16x32xf32>
    %15 = arith.subf %4, %14 : vector<16x32xf32>
    %16 = arith.mulf %15, %15 : vector<16x32xf32>
    %cst_15 = arith.constant dense<0.000000e+00> : vector<16xf32>
    %17 = vector.multi_reduction <add>, %16, %cst_15 [1] : vector<16x32xf32> to vector<16xf32>
    %18 = vector.shape_cast %17 : vector<16xf32> to vector<16x1xf32>
    %cst_16 = arith.constant 3.200000e+01 : f32
    %19 = vector.broadcast %cst_16 : f32 to vector<16x1xf32>
    %20 = arith.divf %18, %19 : vector<16x1xf32>
    %21 = vector.broadcast %13 : vector<16x1xf32> to vector<16x32xf32>
    %22 = arith.subf %4, %21 : vector<16x32xf32>
    %cst_17 = arith.constant 9.99999997E-7 : f32
    %23 = vector.broadcast %cst_17 : f32 to vector<16x1xf32>
    %24 = arith.addf %20, %23 : vector<16x1xf32>
    %25 = math.rsqrt %24 : vector<16x1xf32>
    %26 = vector.broadcast %25 : vector<16x1xf32> to vector<16x32xf32>
    %27 = arith.mulf %22, %26 : vector<16x32xf32>
    %28 = vector.broadcast %7 : vector<1x32xf32> to vector<16x32xf32>
    %29 = arith.mulf %27, %28 : vector<16x32xf32>
    %30 = vector.broadcast %9 : vector<1x32xf32> to vector<16x32xf32>
    %31 = arith.addf %29, %30 : vector<16x32xf32>
    %c0_18 = arith.constant 0 : index
    %c0_19 = arith.constant 0 : index
    %c0_20 = arith.constant 0 : index
    %32 = vector.load %arg6[%c0_18, %c0_19, %c0_20] : memref<2x32x96xf32, #tpu.memory_space<vmem>>, vector<1x32x96xf32>
    %33 = vector.shape_cast %32 : vector<1x32x96xf32> to vector<32x96xf32>
    %cst_21 = arith.constant dense<0.000000e+00> : vector<16x96xf32>
    %34 = tpu.matmul %31, %33, %cst_21 {dimension_numbers = #tpu.dot_dimension_numbers<[1], [0], [0], [1], [0, 0, 1, 1], [], []>} : vector<16x32xf32>, vector<32x96xf32>, vector<16x96xf32> -> vector<16x96xf32>
    %c0_22 = arith.constant 0 : index
    %c0_23 = arith.constant 0 : index
    %c0_24 = arith.constant 0 : index
    %35 = vector.load %arg7[%c0_22, %c0_23, %c0_24] : memref<2x1x96xf32, #tpu.memory_space<vmem>>, vector<1x1x96xf32>
    %36 = vector.shape_cast %35 : vector<1x1x96xf32> to vector<1x96xf32>
    %37 = vector.broadcast %36 : vector<1x96xf32> to vector<16x96xf32>
    %38 = arith.addf %34, %37 : vector<16x96xf32>
    %39 = vector.extract_strided_slice %38 {offsets = [0, 0], sizes = [16, 8], strides = [1, 1]} : vector<16x96xf32> to vector<16x8xf32>
    %40 = vector.extract_strided_slice %38 {offsets = [0, 32], sizes = [16, 8], strides = [1, 1]} : vector<16x96xf32> to vector<16x8xf32>
    %41 = vector.extract_strided_slice %38 {offsets = [0, 64], sizes = [16, 8], strides = [1, 1]} : vector<16x96xf32> to vector<16x8xf32>
    %cst_25 = arith.constant dense<0.000000e+00> : vector<16x16xf32>
    %42 = tpu.matmul %39, %40, %cst_25 {dimension_numbers = #tpu.dot_dimension_numbers<[1], [1], [0], [0], [0, 0, 1, 0], [], []>} : vector<16x8xf32>, vector<16x8xf32>, vector<16x16xf32> -> vector<16x16xf32>
    %cst_26 = arith.constant 0.353553385 : f32
    %43 = vector.broadcast %cst_26 : f32 to vector<16x16xf32>
    %44 = arith.mulf %42, %43 : vector<16x16xf32>
    %45 = arith.addf %44, %5 : vector<16x16xf32>
    %cst_27 = arith.constant dense<0xFF800000> : vector<16xf32>
    %46 = vector.multi_reduction <maximumf>, %45, %cst_27 [1] : vector<16x16xf32> to vector<16xf32>
    %47 = vector.shape_cast %46 : vector<16xf32> to vector<16x1xf32>
    %48 = vector.broadcast %47 : vector<16x1xf32> to vector<16x16xf32>
    %49 = arith.subf %45, %48 : vector<16x16xf32>
    %50 = math.exp %49 : vector<16x16xf32>
    %cst_28 = arith.constant dense<0.000000e+00> : vector<16xf32>
    %51 = vector.multi_reduction <add>, %50, %cst_28 [1] : vector<16x16xf32> to vector<16xf32>
    %52 = vector.shape_cast %51 : vector<16xf32> to vector<16x1xf32>
    %53 = vector.broadcast %52 : vector<16x1xf32> to vector<16x16xf32>
    %54 = arith.divf %50, %53 : vector<16x16xf32>
    %cst_29 = arith.constant dense<0.000000e+00> : vector<16x8xf32>
    %55 = tpu.matmul %54, %41, %cst_29 {dimension_numbers = #tpu.dot_dimension_numbers<[1], [0], [0], [1], [0, 0, 1, 1], [], []>} : vector<16x16xf32>, vector<16x8xf32>, vector<16x8xf32> -> vector<16x8xf32>
    %56 = vector.extract_strided_slice %38 {offsets = [0, 8], sizes = [16, 8], strides = [1, 1]} : vector<16x96xf32> to vector<16x8xf32>
    %57 = vector.extract_strided_slice %38 {offsets = [0, 40], sizes = [16, 8], strides = [1, 1]} : vector<16x96xf32> to vector<16x8xf32>
    %58 = vector.extract_strided_slice %38 {offsets = [0, 72], sizes = [16, 8], strides = [1, 1]} : vector<16x96xf32> to vector<16x8xf32>
    %cst_30 = arith.constant dense<0.000000e+00> : vector<16x16xf32>
    %59 = tpu.matmul %56, %57, %cst_30 {dimension_numbers = #tpu.dot_dimension_numbers<[1], [1], [0], [0], [0, 0, 1, 0], [], []>} : vector<16x8xf32>, vector<16x8xf32>, vector<16x16xf32> -> vector<16x16xf32>
    %cst_31 = arith.constant 0.353553385 : f32
    %60 = vector.broadcast %cst_31 : f32 to vector<16x16xf32>
    %61 = arith.mulf %59, %60 : vector<16x16xf32>
    %62 = arith.addf %61, %5 : vector<16x16xf32>
    %cst_32 = arith.constant dense<0xFF800000> : vector<16xf32>
    %63 = vector.multi_reduction <maximumf>, %62, %cst_32 [1] : vector<16x16xf32> to vector<16xf32>
    %64 = vector.shape_cast %63 : vector<16xf32> to vector<16x1xf32>
    %65 = vector.broadcast %64 : vector<16x1xf32> to vector<16x16xf32>
    %66 = arith.subf %62, %65 : vector<16x16xf32>
    %67 = math.exp %66 : vector<16x16xf32>
    %cst_33 = arith.constant dense<0.000000e+00> : vector<16xf32>
    %68 = vector.multi_reduction <add>, %67, %cst_33 [1] : vector<16x16xf32> to vector<16xf32>
    %69 = vector.shape_cast %68 : vector<16xf32> to vector<16x1xf32>
    %70 = vector.broadcast %69 : vector<16x1xf32> to vector<16x16xf32>
    %71 = arith.divf %67, %70 : vector<16x16xf32>
    %cst_34 = arith.constant dense<0.000000e+00> : vector<16x8xf32>
    %72 = tpu.matmul %71, %58, %cst_34 {dimension_numbers = #tpu.dot_dimension_numbers<[1], [0], [0], [1], [0, 0, 1, 1], [], []>} : vector<16x16xf32>, vector<16x8xf32>, vector<16x8xf32> -> vector<16x8xf32>
    %73 = vector.extract_strided_slice %38 {offsets = [0, 16], sizes = [16, 8], strides = [1, 1]} : vector<16x96xf32> to vector<16x8xf32>
    %74 = vector.extract_strided_slice %38 {offsets = [0, 48], sizes = [16, 8], strides = [1, 1]} : vector<16x96xf32> to vector<16x8xf32>
    %75 = vector.extract_strided_slice %38 {offsets = [0, 80], sizes = [16, 8], strides = [1, 1]} : vector<16x96xf32> to vector<16x8xf32>
    %cst_35 = arith.constant dense<0.000000e+00> : vector<16x16xf32>
    %76 = tpu.matmul %73, %74, %cst_35 {dimension_numbers = #tpu.dot_dimension_numbers<[1], [1], [0], [0], [0, 0, 1, 0], [], []>} : vector<16x8xf32>, vector<16x8xf32>, vector<16x16xf32> -> vector<16x16xf32>
    %cst_36 = arith.constant 0.353553385 : f32
    %77 = vector.broadcast %cst_36 : f32 to vector<16x16xf32>
    %78 = arith.mulf %76, %77 : vector<16x16xf32>
    %79 = arith.addf %78, %5 : vector<16x16xf32>
    %cst_37 = arith.constant dense<0xFF800000> : vector<16xf32>
    %80 = vector.multi_reduction <maximumf>, %79, %cst_37 [1] : vector<16x16xf32> to vector<16xf32>
    %81 = vector.shape_cast %80 : vector<16xf32> to vector<16x1xf32>
    %82 = vector.broadcast %81 : vector<16x1xf32> to vector<16x16xf32>
    %83 = arith.subf %79, %82 : vector<16x16xf32>
    %84 = math.exp %83 : vector<16x16xf32>
    %cst_38 = arith.constant dense<0.000000e+00> : vector<16xf32>
    %85 = vector.multi_reduction <add>, %84, %cst_38 [1] : vector<16x16xf32> to vector<16xf32>
    %86 = vector.shape_cast %85 : vector<16xf32> to vector<16x1xf32>
    %87 = vector.broadcast %86 : vector<16x1xf32> to vector<16x16xf32>
    %88 = arith.divf %84, %87 : vector<16x16xf32>
    %cst_39 = arith.constant dense<0.000000e+00> : vector<16x8xf32>
    %89 = tpu.matmul %88, %75, %cst_39 {dimension_numbers = #tpu.dot_dimension_numbers<[1], [0], [0], [1], [0, 0, 1, 1], [], []>} : vector<16x16xf32>, vector<16x8xf32>, vector<16x8xf32> -> vector<16x8xf32>
    %90 = vector.extract_strided_slice %38 {offsets = [0, 24], sizes = [16, 8], strides = [1, 1]} : vector<16x96xf32> to vector<16x8xf32>
    %91 = vector.extract_strided_slice %38 {offsets = [0, 56], sizes = [16, 8], strides = [1, 1]} : vector<16x96xf32> to vector<16x8xf32>
    %92 = vector.extract_strided_slice %38 {offsets = [0, 88], sizes = [16, 8], strides = [1, 1]} : vector<16x96xf32> to vector<16x8xf32>
    %cst_40 = arith.constant dense<0.000000e+00> : vector<16x16xf32>
    %93 = tpu.matmul %90, %91, %cst_40 {dimension_numbers = #tpu.dot_dimension_numbers<[1], [1], [0], [0], [0, 0, 1, 0], [], []>} : vector<16x8xf32>, vector<16x8xf32>, vector<16x16xf32> -> vector<16x16xf32>
    %cst_41 = arith.constant 0.353553385 : f32
    %94 = vector.broadcast %cst_41 : f32 to vector<16x16xf32>
    %95 = arith.mulf %93, %94 : vector<16x16xf32>
    %96 = arith.addf %95, %5 : vector<16x16xf32>
    %cst_42 = arith.constant dense<0xFF800000> : vector<16xf32>
    %97 = vector.multi_reduction <maximumf>, %96, %cst_42 [1] : vector<16x16xf32> to vector<16xf32>
    %98 = vector.shape_cast %97 : vector<16xf32> to vector<16x1xf32>
    %99 = vector.broadcast %98 : vector<16x1xf32> to vector<16x16xf32>
    %100 = arith.subf %96, %99 : vector<16x16xf32>
    %101 = math.exp %100 : vector<16x16xf32>
    %cst_43 = arith.constant dense<0.000000e+00> : vector<16xf32>
    %102 = vector.multi_reduction <add>, %101, %cst_43 [1] : vector<16x16xf32> to vector<16xf32>
    %103 = vector.shape_cast %102 : vector<16xf32> to vector<16x1xf32>
    %104 = vector.broadcast %103 : vector<16x1xf32> to vector<16x16xf32>
    %105 = arith.divf %101, %104 : vector<16x16xf32>
    %cst_44 = arith.constant dense<0.000000e+00> : vector<16x8xf32>
    %106 = tpu.matmul %105, %92, %cst_44 {dimension_numbers = #tpu.dot_dimension_numbers<[1], [0], [0], [1], [0, 0, 1, 1], [], []>} : vector<16x16xf32>, vector<16x8xf32>, vector<16x8xf32> -> vector<16x8xf32>
    %107 = tpu.concatenate %55, %72, %89, %106 in 1 : vector<16x8xf32>, vector<16x8xf32>, vector<16x8xf32>, vector<16x8xf32> -> vector<16x32xf32>
    %c0_45 = arith.constant 0 : index
    %c0_46 = arith.constant 0 : index
    %c0_47 = arith.constant 0 : index
    %108 = vector.load %arg8[%c0_45, %c0_46, %c0_47] : memref<2x32x32xf32, #tpu.memory_space<vmem>>, vector<1x32x32xf32>
    %109 = vector.shape_cast %108 : vector<1x32x32xf32> to vector<32x32xf32>
    %cst_48 = arith.constant dense<0.000000e+00> : vector<16x32xf32>
    %110 = tpu.matmul %107, %109, %cst_48 {dimension_numbers = #tpu.dot_dimension_numbers<[1], [0], [0], [1], [0, 0, 1, 1], [], []>} : vector<16x32xf32>, vector<32x32xf32>, vector<16x32xf32> -> vector<16x32xf32>
    %c0_49 = arith.constant 0 : index
    %c0_50 = arith.constant 0 : index
    %c0_51 = arith.constant 0 : index
    %111 = vector.load %arg9[%c0_49, %c0_50, %c0_51] : memref<2x1x32xf32, #tpu.memory_space<vmem>>, vector<1x1x32xf32>
    %112 = vector.shape_cast %111 : vector<1x1x32xf32> to vector<1x32xf32>
    %113 = vector.broadcast %112 : vector<1x32xf32> to vector<16x32xf32>
    %114 = arith.addf %110, %113 : vector<16x32xf32>
    %115 = arith.addf %4, %114 : vector<16x32xf32>
    %c0_52 = arith.constant 0 : index
    %c0_53 = arith.constant 0 : index
    %c0_54 = arith.constant 0 : index
    %116 = vector.load %arg10[%c0_52, %c0_53, %c0_54] : memref<2x1x32xf32, #tpu.memory_space<vmem>>, vector<1x1x32xf32>
    %117 = vector.shape_cast %116 : vector<1x1x32xf32> to vector<1x32xf32>
    %c0_55 = arith.constant 0 : index
    %c0_56 = arith.constant 0 : index
    %c0_57 = arith.constant 0 : index
    %118 = vector.load %arg11[%c0_55, %c0_56, %c0_57] : memref<2x1x32xf32, #tpu.memory_space<vmem>>, vector<1x1x32xf32>
    %119 = vector.shape_cast %118 : vector<1x1x32xf32> to vector<1x32xf32>
    %cst_58 = arith.constant dense<0.000000e+00> : vector<16xf32>
    %120 = vector.multi_reduction <add>, %115, %cst_58 [1] : vector<16x32xf32> to vector<16xf32>
    %121 = vector.shape_cast %120 : vector<16xf32> to vector<16x1xf32>
    %cst_59 = arith.constant 3.200000e+01 : f32
    %122 = vector.broadcast %cst_59 : f32 to vector<16x1xf32>
    %123 = arith.divf %121, %122 : vector<16x1xf32>
    %124 = vector.broadcast %123 : vector<16x1xf32> to vector<16x32xf32>
    %125 = arith.subf %115, %124 : vector<16x32xf32>
    %126 = arith.mulf %125, %125 : vector<16x32xf32>
    %cst_60 = arith.constant dense<0.000000e+00> : vector<16xf32>
    %127 = vector.multi_reduction <add>, %126, %cst_60 [1] : vector<16x32xf32> to vector<16xf32>
    %128 = vector.shape_cast %127 : vector<16xf32> to vector<16x1xf32>
    %cst_61 = arith.constant 3.200000e+01 : f32
    %129 = vector.broadcast %cst_61 : f32 to vector<16x1xf32>
    %130 = arith.divf %128, %129 : vector<16x1xf32>
    %131 = vector.broadcast %123 : vector<16x1xf32> to vector<16x32xf32>
    %132 = arith.subf %115, %131 : vector<16x32xf32>
    %cst_62 = arith.constant 9.99999997E-7 : f32
    %133 = vector.broadcast %cst_62 : f32 to vector<16x1xf32>
    %134 = arith.addf %130, %133 : vector<16x1xf32>
    %135 = math.rsqrt %134 : vector<16x1xf32>
    %136 = vector.broadcast %135 : vector<16x1xf32> to vector<16x32xf32>
    %137 = arith.mulf %132, %136 : vector<16x32xf32>
    %138 = vector.broadcast %117 : vector<1x32xf32> to vector<16x32xf32>
    %139 = arith.mulf %137, %138 : vector<16x32xf32>
    %140 = vector.broadcast %119 : vector<1x32xf32> to vector<16x32xf32>
    %141 = arith.addf %139, %140 : vector<16x32xf32>
    %c0_63 = arith.constant 0 : index
    %c0_64 = arith.constant 0 : index
    %c0_65 = arith.constant 0 : index
    %142 = vector.load %arg12[%c0_63, %c0_64, %c0_65] : memref<2x32x64xf32, #tpu.memory_space<vmem>>, vector<1x32x64xf32>
    %143 = vector.shape_cast %142 : vector<1x32x64xf32> to vector<32x64xf32>
    %cst_66 = arith.constant dense<0.000000e+00> : vector<16x64xf32>
    %144 = tpu.matmul %141, %143, %cst_66 {dimension_numbers = #tpu.dot_dimension_numbers<[1], [0], [0], [1], [0, 0, 1, 1], [], []>} : vector<16x32xf32>, vector<32x64xf32>, vector<16x64xf32> -> vector<16x64xf32>
    %c0_67 = arith.constant 0 : index
    %c0_68 = arith.constant 0 : index
    %c0_69 = arith.constant 0 : index
    %145 = vector.load %arg13[%c0_67, %c0_68, %c0_69] : memref<2x1x64xf32, #tpu.memory_space<vmem>>, vector<1x1x64xf32>
    %146 = vector.shape_cast %145 : vector<1x1x64xf32> to vector<1x64xf32>
    %147 = vector.broadcast %146 : vector<1x64xf32> to vector<16x64xf32>
    %148 = arith.addf %144, %147 : vector<16x64xf32>
    %cst_70 = arith.constant 5.000000e-01 : f32
    %149 = vector.broadcast %cst_70 : f32 to vector<16x64xf32>
    %150 = arith.mulf %149, %148 : vector<16x64xf32>
    %cst_71 = arith.constant 0.707106769 : f32
    %151 = vector.broadcast %cst_71 : f32 to vector<16x64xf32>
    %152 = arith.mulf %148, %151 : vector<16x64xf32>
    %cst_72 = arith.constant 0.000000e+00 : f32
    %153 = vector.broadcast %cst_72 : f32 to vector<16x64xf32>
    %154 = arith.cmpf olt, %152, %153 : vector<16x64xf32>
    %cst_73 = arith.constant -1.000000e+00 : f32
    %cst_74 = arith.constant 1.000000e+00 : f32
    %155 = vector.broadcast %cst_73 : f32 to vector<16x64xf32>
    %156 = vector.broadcast %cst_74 : f32 to vector<16x64xf32>
    %157 = arith.select %154, %155, %156 : vector<16x64xi1>, vector<16x64xf32>
    %158 = math.absf %152 : vector<16x64xf32>
    %cst_75 = arith.constant 0.327591091 : f32
    %159 = vector.broadcast %cst_75 : f32 to vector<16x64xf32>
    %160 = arith.mulf %159, %158 : vector<16x64xf32>
    %cst_76 = arith.constant 1.000000e+00 : f32
    %161 = vector.broadcast %cst_76 : f32 to vector<16x64xf32>
    %162 = arith.addf %161, %160 : vector<16x64xf32>
    %cst_77 = arith.constant 1.000000e+00 : f32
    %163 = vector.broadcast %cst_77 : f32 to vector<16x64xf32>
    %164 = arith.divf %163, %162 : vector<16x64xf32>
    %cst_78 = arith.constant 1.06140542 : f32
    %165 = vector.broadcast %cst_78 : f32 to vector<16x64xf32>
    %166 = arith.mulf %165, %164 : vector<16x64xf32>
    %cst_79 = arith.constant -1.45315206 : f32
    %167 = vector.broadcast %cst_79 : f32 to vector<16x64xf32>
    %168 = arith.addf %166, %167 : vector<16x64xf32>
    %169 = arith.mulf %168, %164 : vector<16x64xf32>
    %cst_80 = arith.constant 1.42141378 : f32
    %170 = vector.broadcast %cst_80 : f32 to vector<16x64xf32>
    %171 = arith.addf %169, %170 : vector<16x64xf32>
    %172 = arith.mulf %171, %164 : vector<16x64xf32>
    %cst_81 = arith.constant -0.284496725 : f32
    %173 = vector.broadcast %cst_81 : f32 to vector<16x64xf32>
    %174 = arith.addf %172, %173 : vector<16x64xf32>
    %175 = arith.mulf %174, %164 : vector<16x64xf32>
    %cst_82 = arith.constant 0.254829586 : f32
    %176 = vector.broadcast %cst_82 : f32 to vector<16x64xf32>
    %177 = arith.addf %175, %176 : vector<16x64xf32>
    %178 = arith.mulf %177, %164 : vector<16x64xf32>
    %cst_83 = arith.constant 0.000000e+00 : f32
    %179 = vector.broadcast %cst_83 : f32 to vector<16x64xf32>
    %180 = arith.subf %179, %158 : vector<16x64xf32>
    %181 = arith.mulf %180, %158 : vector<16x64xf32>
    %182 = math.exp %181 : vector<16x64xf32>
    %183 = arith.mulf %178, %182 : vector<16x64xf32>
    %cst_84 = arith.constant 1.000000e+00 : f32
    %184 = vector.broadcast %cst_84 : f32 to vector<16x64xf32>
    %185 = arith.subf %184, %183 : vector<16x64xf32>
    %186 = arith.mulf %157, %185 : vector<16x64xf32>
    %cst_85 = arith.constant 1.000000e+00 : f32
    %187 = vector.broadcast %cst_85 : f32 to vector<16x64xf32>
    %188 = arith.addf %187, %186 : vector<16x64xf32>
    %189 = arith.mulf %150, %188 : vector<16x64xf32>
    %c0_86 = arith.constant 0 : index
    %c0_87 = arith.constant 0 : index
    %c0_88 = arith.constant 0 : index
    %190 = vector.load %arg14[%c0_86, %c0_87, %c0_88] : memref<2x64x32xf32, #tpu.memory_space<vmem>>, vector<1x64x32xf32>
    %191 = vector.shape_cast %190 : vector<1x64x32xf32> to vector<64x32xf32>
    %cst_89 = arith.constant dense<0.000000e+00> : vector<16x32xf32>
    %192 = tpu.matmul %189, %191, %cst_89 {dimension_numbers = #tpu.dot_dimension_numbers<[1], [0], [0], [1], [0, 0, 1, 1], [], []>} : vector<16x64xf32>, vector<64x32xf32>, vector<16x32xf32> -> vector<16x32xf32>
    %c0_90 = arith.constant 0 : index
    %c0_91 = arith.constant 0 : index
    %c0_92 = arith.constant 0 : index
    %193 = vector.load %arg15[%c0_90, %c0_91, %c0_92] : memref<2x1x32xf32, #tpu.memory_space<vmem>>, vector<1x1x32xf32>
    %194 = vector.shape_cast %193 : vector<1x1x32xf32> to vector<1x32xf32>
    %195 = vector.broadcast %194 : vector<1x32xf32> to vector<16x32xf32>
    %196 = arith.addf %192, %195 : vector<16x32xf32>
    %197 = arith.addf %115, %196 : vector<16x32xf32>
    %c1 = arith.constant 1 : index
    %c0_93 = arith.constant 0 : index
    %c0_94 = arith.constant 0 : index
    %198 = vector.load %arg4[%c1, %c0_93, %c0_94] : memref<2x1x32xf32, #tpu.memory_space<vmem>>, vector<1x1x32xf32>
    %199 = vector.shape_cast %198 : vector<1x1x32xf32> to vector<1x32xf32>
    %c1_95 = arith.constant 1 : index
    %c0_96 = arith.constant 0 : index
    %c0_97 = arith.constant 0 : index
    %200 = vector.load %arg5[%c1_95, %c0_96, %c0_97] : memref<2x1x32xf32, #tpu.memory_space<vmem>>, vector<1x1x32xf32>
    %201 = vector.shape_cast %200 : vector<1x1x32xf32> to vector<1x32xf32>
    %cst_98 = arith.constant dense<0.000000e+00> : vector<16xf32>
    %202 = vector.multi_reduction <add>, %197, %cst_98 [1] : vector<16x32xf32> to vector<16xf32>
    %203 = vector.shape_cast %202 : vector<16xf32> to vector<16x1xf32>
    %cst_99 = arith.constant 3.200000e+01 : f32
    %204 = vector.broadcast %cst_99 : f32 to vector<16x1xf32>
    %205 = arith.divf %203, %204 : vector<16x1xf32>
    %206 = vector.broadcast %205 : vector<16x1xf32> to vector<16x32xf32>
    %207 = arith.subf %197, %206 : vector<16x32xf32>
    %208 = arith.mulf %207, %207 : vector<16x32xf32>
    %cst_100 = arith.constant dense<0.000000e+00> : vector<16xf32>
    %209 = vector.multi_reduction <add>, %208, %cst_100 [1] : vector<16x32xf32> to vector<16xf32>
    %210 = vector.shape_cast %209 : vector<16xf32> to vector<16x1xf32>
    %cst_101 = arith.constant 3.200000e+01 : f32
    %211 = vector.broadcast %cst_101 : f32 to vector<16x1xf32>
    %212 = arith.divf %210, %211 : vector<16x1xf32>
    %213 = vector.broadcast %205 : vector<16x1xf32> to vector<16x32xf32>
    %214 = arith.subf %197, %213 : vector<16x32xf32>
    %cst_102 = arith.constant 9.99999997E-7 : f32
    %215 = vector.broadcast %cst_102 : f32 to vector<16x1xf32>
    %216 = arith.addf %212, %215 : vector<16x1xf32>
    %217 = math.rsqrt %216 : vector<16x1xf32>
    %218 = vector.broadcast %217 : vector<16x1xf32> to vector<16x32xf32>
    %219 = arith.mulf %214, %218 : vector<16x32xf32>
    %220 = vector.broadcast %199 : vector<1x32xf32> to vector<16x32xf32>
    %221 = arith.mulf %219, %220 : vector<16x32xf32>
    %222 = vector.broadcast %201 : vector<1x32xf32> to vector<16x32xf32>
    %223 = arith.addf %221, %222 : vector<16x32xf32>
    %c1_103 = arith.constant 1 : index
    %c0_104 = arith.constant 0 : index
    %c0_105 = arith.constant 0 : index
    %224 = vector.load %arg6[%c1_103, %c0_104, %c0_105] : memref<2x32x96xf32, #tpu.memory_space<vmem>>, vector<1x32x96xf32>
    %225 = vector.shape_cast %224 : vector<1x32x96xf32> to vector<32x96xf32>
    %cst_106 = arith.constant dense<0.000000e+00> : vector<16x96xf32>
    %226 = tpu.matmul %223, %225, %cst_106 {dimension_numbers = #tpu.dot_dimension_numbers<[1], [0], [0], [1], [0, 0, 1, 1], [], []>} : vector<16x32xf32>, vector<32x96xf32>, vector<16x96xf32> -> vector<16x96xf32>
    %c1_107 = arith.constant 1 : index
    %c0_108 = arith.constant 0 : index
    %c0_109 = arith.constant 0 : index
    %227 = vector.load %arg7[%c1_107, %c0_108, %c0_109] : memref<2x1x96xf32, #tpu.memory_space<vmem>>, vector<1x1x96xf32>
    %228 = vector.shape_cast %227 : vector<1x1x96xf32> to vector<1x96xf32>
    %229 = vector.broadcast %228 : vector<1x96xf32> to vector<16x96xf32>
    %230 = arith.addf %226, %229 : vector<16x96xf32>
    %231 = vector.extract_strided_slice %230 {offsets = [0, 0], sizes = [16, 8], strides = [1, 1]} : vector<16x96xf32> to vector<16x8xf32>
    %232 = vector.extract_strided_slice %230 {offsets = [0, 32], sizes = [16, 8], strides = [1, 1]} : vector<16x96xf32> to vector<16x8xf32>
    %233 = vector.extract_strided_slice %230 {offsets = [0, 64], sizes = [16, 8], strides = [1, 1]} : vector<16x96xf32> to vector<16x8xf32>
    %cst_110 = arith.constant dense<0.000000e+00> : vector<16x16xf32>
    %234 = tpu.matmul %231, %232, %cst_110 {dimension_numbers = #tpu.dot_dimension_numbers<[1], [1], [0], [0], [0, 0, 1, 0], [], []>} : vector<16x8xf32>, vector<16x8xf32>, vector<16x16xf32> -> vector<16x16xf32>
    %cst_111 = arith.constant 0.353553385 : f32
    %235 = vector.broadcast %cst_111 : f32 to vector<16x16xf32>
    %236 = arith.mulf %234, %235 : vector<16x16xf32>
    %237 = arith.addf %236, %5 : vector<16x16xf32>
    %cst_112 = arith.constant dense<0xFF800000> : vector<16xf32>
    %238 = vector.multi_reduction <maximumf>, %237, %cst_112 [1] : vector<16x16xf32> to vector<16xf32>
    %239 = vector.shape_cast %238 : vector<16xf32> to vector<16x1xf32>
    %240 = vector.broadcast %239 : vector<16x1xf32> to vector<16x16xf32>
    %241 = arith.subf %237, %240 : vector<16x16xf32>
    %242 = math.exp %241 : vector<16x16xf32>
    %cst_113 = arith.constant dense<0.000000e+00> : vector<16xf32>
    %243 = vector.multi_reduction <add>, %242, %cst_113 [1] : vector<16x16xf32> to vector<16xf32>
    %244 = vector.shape_cast %243 : vector<16xf32> to vector<16x1xf32>
    %245 = vector.broadcast %244 : vector<16x1xf32> to vector<16x16xf32>
    %246 = arith.divf %242, %245 : vector<16x16xf32>
    %cst_114 = arith.constant dense<0.000000e+00> : vector<16x8xf32>
    %247 = tpu.matmul %246, %233, %cst_114 {dimension_numbers = #tpu.dot_dimension_numbers<[1], [0], [0], [1], [0, 0, 1, 1], [], []>} : vector<16x16xf32>, vector<16x8xf32>, vector<16x8xf32> -> vector<16x8xf32>
    %248 = vector.extract_strided_slice %230 {offsets = [0, 8], sizes = [16, 8], strides = [1, 1]} : vector<16x96xf32> to vector<16x8xf32>
    %249 = vector.extract_strided_slice %230 {offsets = [0, 40], sizes = [16, 8], strides = [1, 1]} : vector<16x96xf32> to vector<16x8xf32>
    %250 = vector.extract_strided_slice %230 {offsets = [0, 72], sizes = [16, 8], strides = [1, 1]} : vector<16x96xf32> to vector<16x8xf32>
    %cst_115 = arith.constant dense<0.000000e+00> : vector<16x16xf32>
    %251 = tpu.matmul %248, %249, %cst_115 {dimension_numbers = #tpu.dot_dimension_numbers<[1], [1], [0], [0], [0, 0, 1, 0], [], []>} : vector<16x8xf32>, vector<16x8xf32>, vector<16x16xf32> -> vector<16x16xf32>
    %cst_116 = arith.constant 0.353553385 : f32
    %252 = vector.broadcast %cst_116 : f32 to vector<16x16xf32>
    %253 = arith.mulf %251, %252 : vector<16x16xf32>
    %254 = arith.addf %253, %5 : vector<16x16xf32>
    %cst_117 = arith.constant dense<0xFF800000> : vector<16xf32>
    %255 = vector.multi_reduction <maximumf>, %254, %cst_117 [1] : vector<16x16xf32> to vector<16xf32>
    %256 = vector.shape_cast %255 : vector<16xf32> to vector<16x1xf32>
    %257 = vector.broadcast %256 : vector<16x1xf32> to vector<16x16xf32>
    %258 = arith.subf %254, %257 : vector<16x16xf32>
    %259 = math.exp %258 : vector<16x16xf32>
    %cst_118 = arith.constant dense<0.000000e+00> : vector<16xf32>
    %260 = vector.multi_reduction <add>, %259, %cst_118 [1] : vector<16x16xf32> to vector<16xf32>
    %261 = vector.shape_cast %260 : vector<16xf32> to vector<16x1xf32>
    %262 = vector.broadcast %261 : vector<16x1xf32> to vector<16x16xf32>
    %263 = arith.divf %259, %262 : vector<16x16xf32>
    %cst_119 = arith.constant dense<0.000000e+00> : vector<16x8xf32>
    %264 = tpu.matmul %263, %250, %cst_119 {dimension_numbers = #tpu.dot_dimension_numbers<[1], [0], [0], [1], [0, 0, 1, 1], [], []>} : vector<16x16xf32>, vector<16x8xf32>, vector<16x8xf32> -> vector<16x8xf32>
    %265 = vector.extract_strided_slice %230 {offsets = [0, 16], sizes = [16, 8], strides = [1, 1]} : vector<16x96xf32> to vector<16x8xf32>
    %266 = vector.extract_strided_slice %230 {offsets = [0, 48], sizes = [16, 8], strides = [1, 1]} : vector<16x96xf32> to vector<16x8xf32>
    %267 = vector.extract_strided_slice %230 {offsets = [0, 80], sizes = [16, 8], strides = [1, 1]} : vector<16x96xf32> to vector<16x8xf32>
    %cst_120 = arith.constant dense<0.000000e+00> : vector<16x16xf32>
    %268 = tpu.matmul %265, %266, %cst_120 {dimension_numbers = #tpu.dot_dimension_numbers<[1], [1], [0], [0], [0, 0, 1, 0], [], []>} : vector<16x8xf32>, vector<16x8xf32>, vector<16x16xf32> -> vector<16x16xf32>
    %cst_121 = arith.constant 0.353553385 : f32
    %269 = vector.broadcast %cst_121 : f32 to vector<16x16xf32>
    %270 = arith.mulf %268, %269 : vector<16x16xf32>
    %271 = arith.addf %270, %5 : vector<16x16xf32>
    %cst_122 = arith.constant dense<0xFF800000> : vector<16xf32>
    %272 = vector.multi_reduction <maximumf>, %271, %cst_122 [1] : vector<16x16xf32> to vector<16xf32>
    %273 = vector.shape_cast %272 : vector<16xf32> to vector<16x1xf32>
    %274 = vector.broadcast %273 : vector<16x1xf32> to vector<16x16xf32>
    %275 = arith.subf %271, %274 : vector<16x16xf32>
    %276 = math.exp %275 : vector<16x16xf32>
    %cst_123 = arith.constant dense<0.000000e+00> : vector<16xf32>
    %277 = vector.multi_reduction <add>, %276, %cst_123 [1] : vector<16x16xf32> to vector<16xf32>
    %278 = vector.shape_cast %277 : vector<16xf32> to vector<16x1xf32>
    %279 = vector.broadcast %278 : vector<16x1xf32> to vector<16x16xf32>
    %280 = arith.divf %276, %279 : vector<16x16xf32>
    %cst_124 = arith.constant dense<0.000000e+00> : vector<16x8xf32>
    %281 = tpu.matmul %280, %267, %cst_124 {dimension_numbers = #tpu.dot_dimension_numbers<[1], [0], [0], [1], [0, 0, 1, 1], [], []>} : vector<16x16xf32>, vector<16x8xf32>, vector<16x8xf32> -> vector<16x8xf32>
    %282 = vector.extract_strided_slice %230 {offsets = [0, 24], sizes = [16, 8], strides = [1, 1]} : vector<16x96xf32> to vector<16x8xf32>
    %283 = vector.extract_strided_slice %230 {offsets = [0, 56], sizes = [16, 8], strides = [1, 1]} : vector<16x96xf32> to vector<16x8xf32>
    %284 = vector.extract_strided_slice %230 {offsets = [0, 88], sizes = [16, 8], strides = [1, 1]} : vector<16x96xf32> to vector<16x8xf32>
    %cst_125 = arith.constant dense<0.000000e+00> : vector<16x16xf32>
    %285 = tpu.matmul %282, %283, %cst_125 {dimension_numbers = #tpu.dot_dimension_numbers<[1], [1], [0], [0], [0, 0, 1, 0], [], []>} : vector<16x8xf32>, vector<16x8xf32>, vector<16x16xf32> -> vector<16x16xf32>
    %cst_126 = arith.constant 0.353553385 : f32
    %286 = vector.broadcast %cst_126 : f32 to vector<16x16xf32>
    %287 = arith.mulf %285, %286 : vector<16x16xf32>
    %288 = arith.addf %287, %5 : vector<16x16xf32>
    %cst_127 = arith.constant dense<0xFF800000> : vector<16xf32>
    %289 = vector.multi_reduction <maximumf>, %288, %cst_127 [1] : vector<16x16xf32> to vector<16xf32>
    %290 = vector.shape_cast %289 : vector<16xf32> to vector<16x1xf32>
    %291 = vector.broadcast %290 : vector<16x1xf32> to vector<16x16xf32>
    %292 = arith.subf %288, %291 : vector<16x16xf32>
    %293 = math.exp %292 : vector<16x16xf32>
    %cst_128 = arith.constant dense<0.000000e+00> : vector<16xf32>
    %294 = vector.multi_reduction <add>, %293, %cst_128 [1] : vector<16x16xf32> to vector<16xf32>
    %295 = vector.shape_cast %294 : vector<16xf32> to vector<16x1xf32>
    %296 = vector.broadcast %295 : vector<16x1xf32> to vector<16x16xf32>
    %297 = arith.divf %293, %296 : vector<16x16xf32>
    %cst_129 = arith.constant dense<0.000000e+00> : vector<16x8xf32>
    %298 = tpu.matmul %297, %284, %cst_129 {dimension_numbers = #tpu.dot_dimension_numbers<[1], [0], [0], [1], [0, 0, 1, 1], [], []>} : vector<16x16xf32>, vector<16x8xf32>, vector<16x8xf32> -> vector<16x8xf32>
    %299 = tpu.concatenate %247, %264, %281, %298 in 1 : vector<16x8xf32>, vector<16x8xf32>, vector<16x8xf32>, vector<16x8xf32> -> vector<16x32xf32>
    %c1_130 = arith.constant 1 : index
    %c0_131 = arith.constant 0 : index
    %c0_132 = arith.constant 0 : index
    %300 = vector.load %arg8[%c1_130, %c0_131, %c0_132] : memref<2x32x32xf32, #tpu.memory_space<vmem>>, vector<1x32x32xf32>
    %301 = vector.shape_cast %300 : vector<1x32x32xf32> to vector<32x32xf32>
    %cst_133 = arith.constant dense<0.000000e+00> : vector<16x32xf32>
    %302 = tpu.matmul %299, %301, %cst_133 {dimension_numbers = #tpu.dot_dimension_numbers<[1], [0], [0], [1], [0, 0, 1, 1], [], []>} : vector<16x32xf32>, vector<32x32xf32>, vector<16x32xf32> -> vector<16x32xf32>
    %c1_134 = arith.constant 1 : index
    %c0_135 = arith.constant 0 : index
    %c0_136 = arith.constant 0 : index
    %303 = vector.load %arg9[%c1_134, %c0_135, %c0_136] : memref<2x1x32xf32, #tpu.memory_space<vmem>>, vector<1x1x32xf32>
    %304 = vector.shape_cast %303 : vector<1x1x32xf32> to vector<1x32xf32>
    %305 = vector.broadcast %304 : vector<1x32xf32> to vector<16x32xf32>
    %306 = arith.addf %302, %305 : vector<16x32xf32>
    %307 = arith.addf %197, %306 : vector<16x32xf32>
    %c1_137 = arith.constant 1 : index
    %c0_138 = arith.constant 0 : index
    %c0_139 = arith.constant 0 : index
    %308 = vector.load %arg10[%c1_137, %c0_138, %c0_139] : memref<2x1x32xf32, #tpu.memory_space<vmem>>, vector<1x1x32xf32>
    %309 = vector.shape_cast %308 : vector<1x1x32xf32> to vector<1x32xf32>
    %c1_140 = arith.constant 1 : index
    %c0_141 = arith.constant 0 : index
    %c0_142 = arith.constant 0 : index
    %310 = vector.load %arg11[%c1_140, %c0_141, %c0_142] : memref<2x1x32xf32, #tpu.memory_space<vmem>>, vector<1x1x32xf32>
    %311 = vector.shape_cast %310 : vector<1x1x32xf32> to vector<1x32xf32>
    %cst_143 = arith.constant dense<0.000000e+00> : vector<16xf32>
    %312 = vector.multi_reduction <add>, %307, %cst_143 [1] : vector<16x32xf32> to vector<16xf32>
    %313 = vector.shape_cast %312 : vector<16xf32> to vector<16x1xf32>
    %cst_144 = arith.constant 3.200000e+01 : f32
    %314 = vector.broadcast %cst_144 : f32 to vector<16x1xf32>
    %315 = arith.divf %313, %314 : vector<16x1xf32>
    %316 = vector.broadcast %315 : vector<16x1xf32> to vector<16x32xf32>
    %317 = arith.subf %307, %316 : vector<16x32xf32>
    %318 = arith.mulf %317, %317 : vector<16x32xf32>
    %cst_145 = arith.constant dense<0.000000e+00> : vector<16xf32>
    %319 = vector.multi_reduction <add>, %318, %cst_145 [1] : vector<16x32xf32> to vector<16xf32>
    %320 = vector.shape_cast %319 : vector<16xf32> to vector<16x1xf32>
    %cst_146 = arith.constant 3.200000e+01 : f32
    %321 = vector.broadcast %cst_146 : f32 to vector<16x1xf32>
    %322 = arith.divf %320, %321 : vector<16x1xf32>
    %323 = vector.broadcast %315 : vector<16x1xf32> to vector<16x32xf32>
    %324 = arith.subf %307, %323 : vector<16x32xf32>
    %cst_147 = arith.constant 9.99999997E-7 : f32
    %325 = vector.broadcast %cst_147 : f32 to vector<16x1xf32>
    %326 = arith.addf %322, %325 : vector<16x1xf32>
    %327 = math.rsqrt %326 : vector<16x1xf32>
    %328 = vector.broadcast %327 : vector<16x1xf32> to vector<16x32xf32>
    %329 = arith.mulf %324, %328 : vector<16x32xf32>
    %330 = vector.broadcast %309 : vector<1x32xf32> to vector<16x32xf32>
    %331 = arith.mulf %329, %330 : vector<16x32xf32>
    %332 = vector.broadcast %311 : vector<1x32xf32> to vector<16x32xf32>
    %333 = arith.addf %331, %332 : vector<16x32xf32>
    %c1_148 = arith.constant 1 : index
    %c0_149 = arith.constant 0 : index
    %c0_150 = arith.constant 0 : index
    %334 = vector.load %arg12[%c1_148, %c0_149, %c0_150] : memref<2x32x64xf32, #tpu.memory_space<vmem>>, vector<1x32x64xf32>
    %335 = vector.shape_cast %334 : vector<1x32x64xf32> to vector<32x64xf32>
    %cst_151 = arith.constant dense<0.000000e+00> : vector<16x64xf32>
    %336 = tpu.matmul %333, %335, %cst_151 {dimension_numbers = #tpu.dot_dimension_numbers<[1], [0], [0], [1], [0, 0, 1, 1], [], []>} : vector<16x32xf32>, vector<32x64xf32>, vector<16x64xf32> -> vector<16x64xf32>
    %c1_152 = arith.constant 1 : index
    %c0_153 = arith.constant 0 : index
    %c0_154 = arith.constant 0 : index
    %337 = vector.load %arg13[%c1_152, %c0_153, %c0_154] : memref<2x1x64xf32, #tpu.memory_space<vmem>>, vector<1x1x64xf32>
    %338 = vector.shape_cast %337 : vector<1x1x64xf32> to vector<1x64xf32>
    %339 = vector.broadcast %338 : vector<1x64xf32> to vector<16x64xf32>
    %340 = arith.addf %336, %339 : vector<16x64xf32>
    %cst_155 = arith.constant 5.000000e-01 : f32
    %341 = vector.broadcast %cst_155 : f32 to vector<16x64xf32>
    %342 = arith.mulf %341, %340 : vector<16x64xf32>
    %cst_156 = arith.constant 0.707106769 : f32
    %343 = vector.broadcast %cst_156 : f32 to vector<16x64xf32>
    %344 = arith.mulf %340, %343 : vector<16x64xf32>
    %cst_157 = arith.constant 0.000000e+00 : f32
    %345 = vector.broadcast %cst_157 : f32 to vector<16x64xf32>
    %346 = arith.cmpf olt, %344, %345 : vector<16x64xf32>
    %cst_158 = arith.constant -1.000000e+00 : f32
    %cst_159 = arith.constant 1.000000e+00 : f32
    %347 = vector.broadcast %cst_158 : f32 to vector<16x64xf32>
    %348 = vector.broadcast %cst_159 : f32 to vector<16x64xf32>
    %349 = arith.select %346, %347, %348 : vector<16x64xi1>, vector<16x64xf32>
    %350 = math.absf %344 : vector<16x64xf32>
    %cst_160 = arith.constant 0.327591091 : f32
    %351 = vector.broadcast %cst_160 : f32 to vector<16x64xf32>
    %352 = arith.mulf %351, %350 : vector<16x64xf32>
    %cst_161 = arith.constant 1.000000e+00 : f32
    %353 = vector.broadcast %cst_161 : f32 to vector<16x64xf32>
    %354 = arith.addf %353, %352 : vector<16x64xf32>
    %cst_162 = arith.constant 1.000000e+00 : f32
    %355 = vector.broadcast %cst_162 : f32 to vector<16x64xf32>
    %356 = arith.divf %355, %354 : vector<16x64xf32>
    %cst_163 = arith.constant 1.06140542 : f32
    %357 = vector.broadcast %cst_163 : f32 to vector<16x64xf32>
    %358 = arith.mulf %357, %356 : vector<16x64xf32>
    %cst_164 = arith.constant -1.45315206 : f32
    %359 = vector.broadcast %cst_164 : f32 to vector<16x64xf32>
    %360 = arith.addf %358, %359 : vector<16x64xf32>
    %361 = arith.mulf %360, %356 : vector<16x64xf32>
    %cst_165 = arith.constant 1.42141378 : f32
    %362 = vector.broadcast %cst_165 : f32 to vector<16x64xf32>
    %363 = arith.addf %361, %362 : vector<16x64xf32>
    %364 = arith.mulf %363, %356 : vector<16x64xf32>
    %cst_166 = arith.constant -0.284496725 : f32
    %365 = vector.broadcast %cst_166 : f32 to vector<16x64xf32>
    %366 = arith.addf %364, %365 : vector<16x64xf32>
    %367 = arith.mulf %366, %356 : vector<16x64xf32>
    %cst_167 = arith.constant 0.254829586 : f32
    %368 = vector.broadcast %cst_167 : f32 to vector<16x64xf32>
    %369 = arith.addf %367, %368 : vector<16x64xf32>
    %370 = arith.mulf %369, %356 : vector<16x64xf32>
    %cst_168 = arith.constant 0.000000e+00 : f32
    %371 = vector.broadcast %cst_168 : f32 to vector<16x64xf32>
    %372 = arith.subf %371, %350 : vector<16x64xf32>
    %373 = arith.mulf %372, %350 : vector<16x64xf32>
    %374 = math.exp %373 : vector<16x64xf32>
    %375 = arith.mulf %370, %374 : vector<16x64xf32>
    %cst_169 = arith.constant 1.000000e+00 : f32
    %376 = vector.broadcast %cst_169 : f32 to vector<16x64xf32>
    %377 = arith.subf %376, %375 : vector<16x64xf32>
    %378 = arith.mulf %349, %377 : vector<16x64xf32>
    %cst_170 = arith.constant 1.000000e+00 : f32
    %379 = vector.broadcast %cst_170 : f32 to vector<16x64xf32>
    %380 = arith.addf %379, %378 : vector<16x64xf32>
    %381 = arith.mulf %342, %380 : vector<16x64xf32>
    %c1_171 = arith.constant 1 : index
    %c0_172 = arith.constant 0 : index
    %c0_173 = arith.constant 0 : index
    %382 = vector.load %arg14[%c1_171, %c0_172, %c0_173] : memref<2x64x32xf32, #tpu.memory_space<vmem>>, vector<1x64x32xf32>
    %383 = vector.shape_cast %382 : vector<1x64x32xf32> to vector<64x32xf32>
    %cst_174 = arith.constant dense<0.000000e+00> : vector<16x32xf32>
    %384 = tpu.matmul %381, %383, %cst_174 {dimension_numbers = #tpu.dot_dimension_numbers<[1], [0], [0], [1], [0, 0, 1, 1], [], []>} : vector<16x64xf32>, vector<64x32xf32>, vector<16x32xf32> -> vector<16x32xf32>
    %c1_175 = arith.constant 1 : index
    %c0_176 = arith.constant 0 : index
    %c0_177 = arith.constant 0 : index
    %385 = vector.load %arg15[%c1_175, %c0_176, %c0_177] : memref<2x1x32xf32, #tpu.memory_space<vmem>>, vector<1x1x32xf32>
    %386 = vector.shape_cast %385 : vector<1x1x32xf32> to vector<1x32xf32>
    %387 = vector.broadcast %386 : vector<1x32xf32> to vector<16x32xf32>
    %388 = arith.addf %384, %387 : vector<16x32xf32>
    %389 = arith.addf %307, %388 : vector<16x32xf32>
    %c0_178 = arith.constant 0 : index
    %c0_179 = arith.constant 0 : index
    %390 = vector.load %arg16[%c0_178, %c0_179] : memref<1x32xf32, #tpu.memory_space<vmem>>, vector<1x32xf32>
    %c0_180 = arith.constant 0 : index
    %c0_181 = arith.constant 0 : index
    %391 = vector.load %arg17[%c0_180, %c0_181] : memref<1x32xf32, #tpu.memory_space<vmem>>, vector<1x32xf32>
    %cst_182 = arith.constant dense<0.000000e+00> : vector<16xf32>
    %392 = vector.multi_reduction <add>, %389, %cst_182 [1] : vector<16x32xf32> to vector<16xf32>
    %393 = vector.shape_cast %392 : vector<16xf32> to vector<16x1xf32>
    %cst_183 = arith.constant 3.200000e+01 : f32
    %394 = vector.broadcast %cst_183 : f32 to vector<16x1xf32>
    %395 = arith.divf %393, %394 : vector<16x1xf32>
    %396 = vector.broadcast %395 : vector<16x1xf32> to vector<16x32xf32>
    %397 = arith.subf %389, %396 : vector<16x32xf32>
    %398 = arith.mulf %397, %397 : vector<16x32xf32>
    %cst_184 = arith.constant dense<0.000000e+00> : vector<16xf32>
    %399 = vector.multi_reduction <add>, %398, %cst_184 [1] : vector<16x32xf32> to vector<16xf32>
    %400 = vector.shape_cast %399 : vector<16xf32> to vector<16x1xf32>
    %cst_185 = arith.constant 3.200000e+01 : f32
    %401 = vector.broadcast %cst_185 : f32 to vector<16x1xf32>
    %402 = arith.divf %400, %401 : vector<16x1xf32>
    %403 = vector.broadcast %395 : vector<16x1xf32> to vector<16x32xf32>
    %404 = arith.subf %389, %403 : vector<16x32xf32>
    %cst_186 = arith.constant 9.99999997E-7 : f32
    %405 = vector.broadcast %cst_186 : f32 to vector<16x1xf32>
    %406 = arith.addf %402, %405 : vector<16x1xf32>
    %407 = math.rsqrt %406 : vector<16x1xf32>
    %408 = vector.broadcast %407 : vector<16x1xf32> to vector<16x32xf32>
    %409 = arith.mulf %404, %408 : vector<16x32xf32>
    %410 = vector.broadcast %390 : vector<1x32xf32> to vector<16x32xf32>
    %411 = arith.mulf %409, %410 : vector<16x32xf32>
    %412 = vector.broadcast %391 : vector<1x32xf32> to vector<16x32xf32>
    %413 = arith.addf %411, %412 : vector<16x32xf32>
    %c0_187 = arith.constant 0 : index
    %c0_188 = arith.constant 0 : index
    %414 = vector.load %arg18[%c0_187, %c0_188] : memref<32x128xf32, #tpu.memory_space<vmem>>, vector<32x128xf32>
    %cst_189 = arith.constant dense<0.000000e+00> : vector<16x128xf32>
    %415 = tpu.matmul %413, %414, %cst_189 {dimension_numbers = #tpu.dot_dimension_numbers<[1], [0], [0], [1], [0, 0, 1, 1], [], []>} : vector<16x32xf32>, vector<32x128xf32>, vector<16x128xf32> -> vector<16x128xf32>
    %c0_190 = arith.constant 0 : index
    %c0_191 = arith.constant 0 : index
    %416 = vector.load %arg19[%c0_190, %c0_191] : memref<1x128xf32, #tpu.memory_space<vmem>>, vector<1x128xf32>
    %417 = vector.broadcast %416 : vector<1x128xf32> to vector<16x128xf32>
    %418 = arith.addf %415, %417 : vector<16x128xf32>
    %c0_192 = arith.constant 0 : index
    %c0_193 = arith.constant 0 : index
    %419 = vector.load %arg20[%c0_192, %c0_193] : memref<16x128xf32, #tpu.memory_space<vmem>>, vector<16x128xf32>
    tpu.vector_store %arg20[%c0_192, %c0_193], %418 {strides = array<i32>} : memref<16x128xf32, #tpu.memory_space<vmem>>, vector<16x128xf32>,
    return
  }
}

</mosaic_0001>

<bundles_post_ra>
// kernel: tpu_custom_call.1
= control target key start
LH: loop header
LB: loop body
LE: loop exit
PB: predicated region body
PF: predicated region fallthrough
CT: control target
= control target key end

     0   :  { %s5353_s0 = inlined_call_operand.vmem [shape: f32[16,768], index: 0, kind: input, shape index: {}]   ;;  %s5354_s1 = inlined_call_operand.vmem [shape: f32[768,32], index: 1, kind: input, shape index: {}]   ;;  %s5355_s2 = inlined_call_operand.vmem [shape: f32[16,32], index: 2, kind: input, shape index: {}]   ;;  %s5356_s3 = inlined_call_operand.vmem [shape: f32[16,16], index: 3, kind: input, shape index: {}]   ;;  %s5357_s4 = inlined_call_operand.vmem [shape: f32[2,1,32], index: 4, kind: input, shape index: {}]   ;;  %s5358_s5 = inlined_call_operand.vmem [shape: f32[2,1,32], index: 5, kind: input, shape index: {}]   ;;  %s5359_s6 = inlined_call_operand.vmem [shape: f32[2,32,96], index: 6, kind: input, shape index: {}]   ;;  %s5360_s7 = inlined_call_operand.vmem [shape: f32[2,1,96], index: 7, kind: input, shape index: {}]   ;;  %s5361_s8 = inlined_call_operand.vmem [shape: f32[2,32,32], index: 8, kind: input, shape index: {}]   ;;  %s5362_s9 = inlined_call_operand.vmem [shape: f32[2,1,32], index: 9, kind: input, shape index: {}]   ;;  %s5363_s10 = inlined_call_operand.vmem [shape: f32[2,1,32], index: 10, kind: input, shape index: {}]   ;;  %s5364_s11 = inlined_call_operand.vmem [shape: f32[2,1,32], index: 11, kind: input, shape index: {}]   ;;  %s5365_s12 = inlined_call_operand.vmem [shape: f32[2,32,64], index: 12, kind: input, shape index: {}]   ;;  %s5366_s13 = inlined_call_operand.vmem [shape: f32[2,1,64], index: 13, kind: input, shape index: {}]   ;;  %s5367_s14 = inlined_call_operand.vmem [shape: f32[2,64,32], index: 14, kind: input, shape index: {}]   ;;  %s5368_s15 = inlined_call_operand.vmem [shape: f32[2,1,32], index: 15, kind: input, shape index: {}]   ;;  %s5369_s16 = inlined_call_operand.vmem [shape: f32[1,32], index: 16, kind: input, shape index: {}]   ;;  %s5370_s17 = inlined_call_operand.vmem [shape: f32[1,32], index: 17, kind: input, shape index: {}]   ;;  %s5371_s18 = inlined_call_operand.vmem [shape: f32[32,128], index: 18, kind: input, shape index: {}]   ;;  %s5372_s19 = inlined_call_operand.vmem [shape: f32[1,128], index: 19, kind: input, shape index: {}]   ;;  %s5373_s20 = inlined_call_operand.hbm [shape: f32[16,128], index: 20, kind: output, shape index: {}]  }
   0x1   :  { %5393 = sst [smem:[#allocation5_spill]] %s5353_s0 }
   0x2   :  { %5394 = sst [smem:[#allocation6_spill]] %s5354_s1 }
   0x3   :  { %5395 = sst [smem:[#allocation7_spill]] %s5355_s2 }
   0x4   :  { %5396 = sst [smem:[#allocation8_spill]] %s5356_s3 }
   0x5   :  { %5397 = sst [smem:[#allocation9_spill]] %s5357_s4 }
   0x6   :  { %s5398_s23 = sld [smem:[#allocation6_spill]]  ;;  %s5399_s29 = sld [smem:[#allocation5_spill]] }
   0xc   :  { %v94_v0 = vld [vmem:[%s5398_s23 + $0x80] sm:$0xff]  ;;  %v95_v1 = vld [vmem:[%s5398_s23 + $0x88] sm:$0xff]  ;;  %v96_v11 = vld [vmem:[%s5398_s23 + $0x90] sm:$0xff] }
   0xd   :  { %v78_v2 = vld [vmem:[%s5398_s23] sm:$0xff]  ;;  %v3879_v3 = vpack.c.bf16 %v95_v1, %v94_v0  ;;  %v79_v4 = vld [vmem:[%s5398_s23 + $0x8] sm:$0xff]  ;;  %v97_v13 = vld [vmem:[%s5398_s23 + $0x98] sm:$0xff] }
   0xe   :  { %v126_v5 = vld [vmem:[%s5398_s23 + $0x180] sm:$0xff]  ;;  %v127_v6 = vld [vmem:[%s5398_s23 + $0x188] sm:$0xff]  ;;  %v3881_v7 = vpack.c.bf16 %v79_v4, %v78_v2  ;;  %v80_v14 = vld [vmem:[%s5398_s23 + $0x10] sm:$0xff]  ;;  %v3883_v16 = vpack.c.bf16 %v97_v13, %v96_v11 }
   0xf   :  { %v3911_v8 = vpack.c.bf16 %v127_v6, %v126_v5  ;;  %v110_v9 = vld [vmem:[%s5398_s23 + $0x100] sm:$0xff]  ;;  %v111_v10 = vld [vmem:[%s5398_s23 + $0x108] sm:$0xff]  ;;  %3880 = vmatprep.subr.bf16.mxu0 %v3879_v3  ;;  %v81_v15 = vld [vmem:[%s5398_s23 + $0x18] sm:$0xff] }
  0x10   :  { %v3913_v12 = vpack.c.bf16 %v111_v10, %v110_v9  ;;  %3882 = vmatpush3.bf16.msra.mxu0 %v3881_v7  ;;  %v3885_v17 = vpack.c.bf16 %v81_v15, %v80_v14  ;;  %v128_v18 = vld [vmem:[%s5398_s23 + $0x190] sm:$0xff]  ;;  %v129_v19 = vld [vmem:[%s5398_s23 + $0x198] sm:$0xff]  ;;  %v98_v23 = vld [vmem:[%s5398_s23 + $0xa0] sm:$0xff] }
  0x11   :  { %3912 = vmatprep.subr.bf16.mxu1 %v3911_v8  ;;  %v112_v20 = vld [vmem:[%s5398_s23 + $0x110] sm:$0xff]  ;;  %v3915_v21 = vpack.c.bf16 %v129_v19, %v128_v18  ;;  %v113_v22 = vld [vmem:[%s5398_s23 + $0x118] sm:$0xff]  ;;  %v99_v24 = vld [vmem:[%s5398_s23 + $0xa8] sm:$0xff]  ;;  %3884 = vmatprep.subr.bf16.mxu0 %v3883_v16 }
  0x12   :  { %3914 = vmatpush3.bf16.msra.mxu1 %v3913_v12  ;;  %v3917_v25 = vpack.c.bf16 %v113_v22, %v112_v20  ;;  %v3887_v26 = vpack.c.bf16 %v99_v24, %v98_v23  ;;  %v82_v27 = vld [vmem:[%s5398_s23 + $0x20] sm:$0xff]  ;;  %v83_v28 = vld [vmem:[%s5398_s23 + $0x28] sm:$0xff]  ;;  %v100_v35 = vld [vmem:[%s5398_s23 + $0xb0] sm:$0xff] }
  0x13   :  { %v130_v29 = vld [vmem:[%s5398_s23 + $0x1a0] sm:$0xff]  ;;  %3916 = vmatprep.subr.bf16.mxu1 %v3915_v21  ;;  %v131_v30 = vld [vmem:[%s5398_s23 + $0x1a8] sm:$0xff]  ;;  %v3889_v33 = vpack.c.bf16 %v83_v28, %v82_v27  ;;  %v101_v36 = vld [vmem:[%s5398_s23 + $0xb8] sm:$0xff] }
  0x14   :  { %v114_v31 = vld [vmem:[%s5398_s23 + $0x120] sm:$0xff]  ;;  %v115_v32 = vld [vmem:[%s5398_s23 + $0x128] sm:$0xff]  ;;  %3886 = vmatpush3.bf16.msra.mxu0 %v3885_v17  ;;  %v3919_v34 = vpack.c.bf16 %v131_v30, %v130_v29  ;;  %v84_v37 = vld [vmem:[%s5398_s23 + $0x30] sm:$0xff]  ;;  %v3891_v39 = vpack.c.bf16 %v101_v36, %v100_v35 }
  0x15   :  { %3888 = vmatprep.subr.bf16.mxu0 %v3887_v26  ;;  %v3921_v38 = vpack.c.bf16 %v115_v32, %v114_v31  ;;  %v85_v40 = vld [vmem:[%s5398_s23 + $0x38] sm:$0xff]  ;;  %v132_v41 = vld [vmem:[%s5398_s23 + $0x1b0] sm:$0xff]  ;;  %v102_v46 = vld [vmem:[%s5398_s23 + $0xc0] sm:$0xff] }
  0x16   :  { %3918 = vmatpush3.bf16.msra.mxu1 %v3917_v25  ;;  %v133_v42 = vld [vmem:[%s5398_s23 + $0x1b8] sm:$0xff]  ;;  %v116_v44 = vld [vmem:[%s5398_s23 + $0x130] sm:$0xff]  ;;  %v103_v47 = vld [vmem:[%s5398_s23 + $0xc8] sm:$0xff]  ;;  %v3893_v48 = vpack.c.bf16 %v85_v40, %v84_v37 }
  0x17   :  { %3920 = vmatprep.subr.bf16.mxu1 %v3919_v34  ;;  %v3923_v43 = vpack.c.bf16 %v133_v42, %v132_v41  ;;  %v117_v45 = vld [vmem:[%s5398_s23 + $0x138] sm:$0xff]  ;;  %v134_v49 = vld [vmem:[%s5398_s23 + $0x1c0] sm:$0xff]  ;;  %v135_v50 = vld [vmem:[%s5398_s23 + $0x1c8] sm:$0xff]  ;;  %v3895_v52 = vpack.c.bf16 %v103_v47, %v102_v46 }
  0x18   :  { %3890 = vmatpush3.bf16.msra.mxu0 %v3889_v33  ;;  %v3925_v51 = vpack.c.bf16 %v117_v45, %v116_v44  ;;  %v86_v53 = vld [vmem:[%s5398_s23 + $0x40] sm:$0xff]  ;;  %v87_v54 = vld [vmem:[%s5398_s23 + $0x48] sm:$0xff]  ;;  %v3927_v56 = vpack.c.bf16 %v135_v50, %v134_v49  ;;  %v104_v58 = vld [vmem:[%s5398_s23 + $0xd0] sm:$0xff] }
  0x19   :  { %3892 = vmatprep.subr.bf16.mxu0 %v3891_v39  ;;  %v118_v55 = vld [vmem:[%s5398_s23 + $0x140] sm:$0xff]  ;;  %v119_v57 = vld [vmem:[%s5398_s23 + $0x148] sm:$0xff]  ;;  %v105_v59 = vld [vmem:[%s5398_s23 + $0xd8] sm:$0xff]  ;;  %v3897_v62 = vpack.c.bf16 %v87_v54, %v86_v53 }
  0x1a   :  { %3922 = vmatpush3.bf16.msra.mxu1 %v3921_v38  ;;  %v136_v60 = vld [vmem:[%s5398_s23 + $0x1d0] sm:$0xff]  ;;  %v137_v61 = vld [vmem:[%s5398_s23 + $0x1d8] sm:$0xff]  ;;  %v3929_v63 = vpack.c.bf16 %v119_v57, %v118_v55  ;;  %v3899_v0 = vpack.c.bf16 %v105_v59, %v104_v58  ;;  %v106_v6 = vld [vmem:[%s5398_s23 + $0xe0] sm:$0xff] }
  0x1b   :  { %3924 = vmatprep.subr.bf16.mxu1 %v3923_v43  ;;  %v88_v1 = vld [vmem:[%s5398_s23 + $0x50] sm:$0xff]  ;;  %v89_v2 = vld [vmem:[%s5398_s23 + $0x58] sm:$0xff]  ;;  %v3931_v4 = vpack.c.bf16 %v137_v61, %v136_v60  ;;  %v107_v7 = vld [vmem:[%s5398_s23 + $0xe8] sm:$0xff] }
  0x1c   :  { %3894 = vmatpush3.bf16.msra.mxu0 %v3893_v48  ;;  %v120_v3 = vld [vmem:[%s5398_s23 + $0x150] sm:$0xff]  ;;  %v121_v5 = vld [vmem:[%s5398_s23 + $0x158] sm:$0xff]  ;;  %v138_v8 = vld [vmem:[%s5398_s23 + $0x1e0] sm:$0xff]  ;;  %v3901_v10 = vpack.c.bf16 %v89_v2, %v88_v1  ;;  %v3903_v14 = vpack.c.bf16 %v107_v7, %v106_v6 }
  0x1d   :  { %3896 = vmatprep.subr.bf16.mxu0 %v3895_v52  ;;  %v139_v9 = vld [vmem:[%s5398_s23 + $0x1e8] sm:$0xff]  ;;  %v90_v11 = vld [vmem:[%s5398_s23 + $0x60] sm:$0xff]  ;;  %v3933_v13 = vpack.c.bf16 %v121_v5, %v120_v3  ;;  %v108_v19 = vld [vmem:[%s5398_s23 + $0xf0] sm:$0xff] }
  0x1e   :  { %3926 = vmatpush3.bf16.msra.mxu1 %v3925_v51  ;;  %v67_v12 = vld [vmem:[%s5399_s29 + $0x8] sm:$0xff]  ;;  %v122_v16 = vld [vmem:[%s5398_s23 + $0x160] sm:$0xff]  ;;  %v3935_v18 = vpack.c.bf16 %v139_v9, %v138_v8  ;;  %v109_v20 = vld [vmem:[%s5398_s23 + $0xf8] sm:$0xff] }
  0x1f   :  { %3928 = vmatprep.subr.bf16.mxu1 %v3927_v56  ;;  %v91_v15 = vld [vmem:[%s5398_s23 + $0x68] sm:$0xff]  ;;  %240 = vmatprep.mubr.f32.mxu0 %v67_v12  ;;  %v69_v21 = vld [vmem:[%s5399_s29 + $0x18] sm:$0xff]  ;;  %v140_v22 = vld [vmem:[%s5398_s23 + $0x1f0] sm:$0xff]  ;;  %v3907_v26 = vpack.c.bf16 %v109_v20, %v108_v19 }
  0x20   :  { %3898 = vmatpush3.bf16.msra.mxu0 %v3897_v62  ;;  %v123_v17 = vld [vmem:[%s5398_s23 + $0x168] sm:$0xff]  ;;  %v141_v23 = vld [vmem:[%s5398_s23 + $0x1f8] sm:$0xff]  ;;  %315 = vmatprep.mubr.f32.mxu1 %v69_v21  ;;  %v3905_v24 = vpack.c.bf16 %v91_v15, %v90_v11  ;;  %v92_v27 = vld [vmem:[%s5398_s23 + $0x70] sm:$0xff] }
  0x21   :  { %3900 = vmatprep.subr.bf16.mxu0 %v3899_v0  ;;  %v3937_v25 = vpack.c.bf16 %v123_v17, %v122_v16  ;;  %v93_v28 = vld [vmem:[%s5398_s23 + $0x78] sm:$0xff]  ;;  %v124_v29 = vld [vmem:[%s5398_s23 + $0x170] sm:$0xff]  ;;  %v3939_v30 = vpack.c.bf16 %v141_v23, %v140_v22  ;;  %v158_v32 = vld [vmem:[%s5398_s23 + $0x280] sm:$0xff] }
  0x22   :  { %3930 = vmatpush3.bf16.msra.mxu1 %v3929_v63  ;;  %v125_v31 = vld [vmem:[%s5398_s23 + $0x178] sm:$0xff]  ;;  %v159_v33 = vld [vmem:[%s5398_s23 + $0x288] sm:$0xff]  ;;  %v3909_v34 = vpack.c.bf16 %v93_v28, %v92_v27  ;;  %v142_v37 = vld [vmem:[%s5398_s23 + $0x200] sm:$0xff] }
  0x23   :  { %3932 = vmatprep.subr.bf16.mxu1 %v3931_v4  ;;  %v3941_v35 = vpack.c.bf16 %v125_v31, %v124_v29  ;;  %v3943_v36 = vpack.c.bf16 %v159_v33, %v158_v32  ;;  %v143_v38 = vld [vmem:[%s5398_s23 + $0x208] sm:$0xff]  ;;  %v160_v39 = vld [vmem:[%s5398_s23 + $0x290] sm:$0xff]  ;;  %v161_v40 = vld [vmem:[%s5398_s23 + $0x298] sm:$0xff] }
  0x24   :  { %3902 = vmatpush3.bf16.msra.mxu0 %v3901_v10  ;;  %v66_v41 = vld [vmem:[%s5399_s29] sm:$0xff]  ;;  %v3945_v42 = vpack.c.bf16 %v143_v38, %v142_v37  ;;  %v68_v43 = vld [vmem:[%s5399_s29 + $0x10] sm:$0xff]  ;;  %v3947_v44 = vpack.c.bf16 %v161_v40, %v160_v39  ;;  %v145_v46 = vld [vmem:[%s5398_s23 + $0x218] sm:$0xff] }
  0x25   :  { %3904 = vmatprep.subr.bf16.mxu0 %v3903_v14  ;;  %v144_v45 = vld [vmem:[%s5398_s23 + $0x210] sm:$0xff]  ;;  %v162_v47 = vld [vmem:[%s5398_s23 + $0x2a0] sm:$0xff]  ;;  %v163_v48 = vld [vmem:[%s5398_s23 + $0x2a8] sm:$0xff] }
  0x26   :  { %3934 = vmatpush3.bf16.msra.mxu1 %v3933_v13  ;;  %v73_v49 = vld [vmem:[%s5399_s29 + $0x38] sm:$0xff]  ;;  %v75_v50 = vld [vmem:[%s5399_s29 + $0x48] sm:$0xff]  ;;  %v3949_v51 = vpack.c.bf16 %v145_v46, %v144_v45  ;;  %v72_v52 = vld [vmem:[%s5399_s29 + $0x30] sm:$0xff] }
  0x27   :  { %3936 = vmatprep.subr.bf16.mxu1 %v3935_v18 }
  0x28   :  { %3906 = vmatpush3.bf16.msra.mxu0 %v3905_v24 }
  0x29   :  { %3908 = vmatprep.subr.bf16.mxu0 %v3907_v26 }
  0x2a   :  { %3938 = vmatpush3.bf16.msra.mxu1 %v3937_v25 }
  0x2b   :  { %3940 = vmatprep.subr.bf16.mxu1 %v3939_v30 }
  0x2c   :  { %3910 = vmatpush3.bf16.msra.mxu0 %v3909_v34 }
  0x2d   :  { %3944 = vmatprep.subr.bf16.mxu0 %v3943_v36 }
  0x2e   :  { %3942 = vmatpush3.bf16.msra.mxu1 %v3941_v35 }
  0x2f   :  { %241 = vmatmul.mubr.f32.vlgmr.msra.gmra.mrb[0].mxu0 %v66_v41 }
  0x30   :  { %3946 = vmatpush3.bf16.msra.mxu0 %v3945_v42 }
  0x31   :  { %316 = vmatmul.mubr.f32.vlgmr.msra.gmra.mrb[0].mxu1 %v68_v43 }
  0x32   :  { %25 = vsyncpa [#allocation3], 0  ;;  %3948 = vmatprep.subr.bf16.mxu0 %v3947_v44  ;;  %v3951_v53 = vpack.c.bf16 %v163_v48, %v162_v47  ;;  %v146_v54 = vld [vmem:[%s5398_s23 + $0x220] sm:$0xff]  ;;  %v147_v55 = vld [vmem:[%s5398_s23 + $0x228] sm:$0xff]  ;;  %245 = vmatprep.mubr.f32.mxu0 %v73_v49  ;;  %s5400_s24 = sld [smem:[#allocation7_spill]]  ;;  %vm405_vm0 = vcmask 261120  }
  0x33   :  { %v74_v56 = vld [vmem:[%s5399_s29 + $0x40] sm:$0xff]  ;;  %v164_v57 = vld [vmem:[%s5398_s23 + $0x2b0] sm:$0xff]  ;;  %v165_v58 = vld [vmem:[%s5398_s23 + $0x2b8] sm:$0xff]  ;;  %320 = vmatprep.mubr.f32.mxu1 %v75_v50  ;;  %246 = vmatmul.mubr.f32.gmra.mrb[2].mxu0 %v72_v52  ;;  %v3953_v60 = vpack.c.bf16 %v147_v55, %v146_v54  ;;  %vm547_vm1 = vcmask 64512   ;;  %s4367_s3 = smov 88   ;;  %s4368_s26 = smov 120  }
  0x34   :  { %v71_v59 = vld [vmem:[%s5399_s29 + $0x28] sm:$0xff]  ;;  %3950 = vmatpush3.bf16.msra.mxu0 %v3949_v51  ;;  %v3955_v61 = vpack.c.bf16 %v165_v58, %v164_v57  ;;  %v148_v62 = vld [vmem:[%s5398_s23 + $0x230] sm:$0xff]  ;;  %v149_v63 = vld [vmem:[%s5398_s23 + $0x238] sm:$0xff]  ;;  %s5390_s27 = smov 80   ;;  %s5388_s28 = smov 112   ;;  %vm635_vm3 = vcmask 130048  }
  0x35   :  { %321 = vmatmul.mubr.f32.gmra.mrb[2].mxu1 %v74_v56  ;;  %3952 = vmatprep.subr.bf16.mxu0 %v3951_v53  ;;  %v166_v0 = vld [vmem:[%s5398_s23 + $0x2c0] sm:$0xff]  ;;  %v167_v1 = vld [vmem:[%s5398_s23 + $0x2c8] sm:$0xff]  ;;  %v3957_v2 = vpack.c.bf16 %v149_v63, %v148_v62  ;;  %v168_v6 = vld [vmem:[%s5398_s23 + $0x2d0] sm:$0xff]  ;;  %s5404_s0 = sld [smem:[#allocation8_spill]]  ;;  %s4371_s22 = smov 64   ;;  %vm1385_vm4 = vcmask 195584  }
  0x36   :  { %390 = vmatprep.mubr.f32.mxu0 %v71_v59  ;;  %v3959_v3 = vpack.c.bf16 %v167_v1, %v166_v0  ;;  %v150_v4 = vld [vmem:[%s5398_s23 + $0x240] sm:$0xff]  ;;  %v151_v5 = vld [vmem:[%s5398_s23 + $0x248] sm:$0xff]  ;;  %v169_v7 = vld [vmem:[%s5398_s23 + $0x2d8] sm:$0xff]  ;;  %s4373_s2 = smov 56   ;;  %s5382_s25 = smov 72   ;;  %vm1687_vm7 = vcmask 523264  }
  0x37   :  { %v3961_v8 = vpack.c.bf16 %v151_v5, %v150_v4  ;;  %v3963_v9 = vpack.c.bf16 %v169_v7, %v168_v6  ;;  %v152_v10 = vld [vmem:[%s5398_s23 + $0x250] sm:$0xff]  ;;  %v153_v11 = vld [vmem:[%s5398_s23 + $0x258] sm:$0xff]  ;;  %v170_v12 = vld [vmem:[%s5398_s23 + $0x2e0] sm:$0xff]  ;;  %s5383_s4 = smov 104   ;;  %s5381_s30 = smov 40  }
  0x38   :  { %3954 = vmatpush3.bf16.msra.mxu0 %v3953_v60  ;;  %v171_v13 = vld [vmem:[%s5398_s23 + $0x2e8] sm:$0xff]  ;;  %v3965_v14 = vpack.c.bf16 %v153_v11, %v152_v10  ;;  %v154_v16 = vld [vmem:[%s5398_s23 + $0x260] sm:$0xff]  ;;  %v172_v18 = vld [vmem:[%s5398_s23 + $0x2f0] sm:$0xff]  ;;  %s5385_s21 = smov 8   ;;  %s5379_s1 = smov 16  }
  0x39   :  { %3956 = vmatprep.subr.bf16.mxu0 %v3955_v61  ;;  %v3967_v15 = vpack.c.bf16 %v171_v13, %v170_v12  ;;  %v155_v17 = vld [vmem:[%s5398_s23 + $0x268] sm:$0xff]  ;;  %v173_v19 = vld [vmem:[%s5398_s23 + $0x2f8] sm:$0xff]  ;;  %v156_v22 = vld [vmem:[%s5398_s23 + $0x270] sm:$0xff] }
  0x3a   :  { %v3969_v20 = vpack.c.bf16 %v155_v17, %v154_v16  ;;  %v3971_v21 = vpack.c.bf16 %v173_v19, %v172_v18  ;;  %v157_v23 = vld [vmem:[%s5398_s23 + $0x278] sm:$0xff]  ;;  %v70_v25 = vld [vmem:[%s5399_s29 + $0x20] sm:$0xff]  ;;  %v76_v27 = vld [vmem:[%s5399_s29 + $0x50] sm:$0xff]  ;;  %s5401_s23 = sld [smem:[#allocation9_spill]] }
  0x3b   :  { %v3973_v24 = vpack.c.bf16 %v157_v23, %v156_v22  ;;  %v77_v26 = vld [vmem:[%s5399_s29 + $0x58] sm:$0xff]  ;;  %v174_v29 = vld [vmem:[%s5400_s24] sm:$0xff]  ;;  %v175_v37 = vld [vmem:[%s5400_s24 + $0x8] sm:$0xff]  ;;  %s4366_s29 = smov 96   ;;  %s5387_s24 = smov 48  }
  0x3c   :  { %3958 = vmatpush3.bf16.msra.mxu0 %v3957_v2  ;;  %v449_v2 = vld [vmem:[%s5359_s6] sm:$0xff]  ;;  %v451_v5 = vld [vmem:[%s5359_s6 + $0x10] sm:$0xff]  ;;  %v452_v6 = vld [vmem:[%s5359_s6 + $0x18] sm:$0xff] }
  0x3d   :  { %3960 = vmatprep.subr.bf16.mxu0 %v3959_v3  ;;  %v450_v3 = vld [vmem:[%s5359_s6 + $0x8] sm:$0xff]  ;;  %v3979_v7 = vpack.c.bf16 %v452_v6, %v451_v5  ;;  %v3300_v17 = vld [vmem:[%s5358_s5] ss:$0 sm:$0xff]  ;;  %vm4875_vm2 = vmpackc.low %vm547_vm1, %vm547_vm1 }
  0x3e   :  { %v3975_v4 = vpack.c.bf16 %v450_v3, %v449_v2 }
  0x40   :  { %3962 = vmatpush3.bf16.msra.mxu0 %v3961_v8  ;;  %3976 = vmatprep.subr.bf16.mxu1 %v3975_v4 }
  0x41   :  { %3964 = vmatprep.subr.bf16.mxu0 %v3963_v9  ;;  %3978 = vmatpush3.bf16.msra.mxu1 %v3975_v4 }
  0x42   :  { %3980 = vmatprep.subr.bf16.mxu1 %v3979_v7 }
  0x44   :  { %3966 = vmatpush3.bf16.msra.mxu0 %v3965_v14 }
  0x45   :  { %3968 = vmatprep.subr.bf16.mxu0 %v3967_v15  ;;  %3982 = vmatpush3.bf16.msra.mxu1 %v3979_v7  ;;  %v3299_v15 = vld [vmem:[%s5401_s23] ss:$0 sm:$0xff] }
  0x48   :  { %3970 = vmatpush3.bf16.msra.mxu0 %v3969_v20 }
  0x49   :  { %3972 = vmatprep.subr.bf16.mxu0 %v3971_v21 }
  0x4c   :  { %3974 = vmatpush3.bf16.msra.mxu0 %v3973_v24  ;;  %v3301_v24 = vld [vmem:[%s5360_s7] ss:$0 sm:$0xff] }
  0x4f   :  { %391 = vmatmul.mubr.f32.vlgmr.msra.gmra.mrb[4].mxu0 %v70_v25 }
  0x50   :  { %395 = vmatprep.mubr.f32.mxu0 %v77_v26 }
  0x53   :  { %396 = vmatmul.mubr.f32.gmra.mrb[6].mxu0 %v76_v27 }
 0x102   :  { %v3444_v28 = vpop.f32.mrb[0].mxu0 }
 0x103   :  { %v3445_v30 = vpop.f32.mrb[1].mxu0 }
 0x104   :  { %v3482_v31 = vpop.f32.mrb[0].mxu1  ;;  %v3446_v32 = vadd.f32 %v3445_v30, %v3444_v28 }
 0x105   :  { %v3483_v33 = vpop.f32.mrb[1].mxu1 }
 0x106   :  { %v3484_v34 = vadd.f32 %v3483_v33, %v3482_v31  ;;  %v243_v35 = vadd.f32 %v3446_v32, %v174_v29  ;;  %v3447_v36 = vpop.f32.mrb[2].mxu0 }
 0x107   :  { %v3448_v38 = vpop.f32.mrb[3].mxu0 }
 0x108   :  { %v3485_v39 = vpop.f32.mrb[2].mxu1  ;;  %v318_v40 = vadd.f32 %v3484_v34, %v243_v35  ;;  %v3449_v41 = vadd.f32 %v3448_v38, %v3447_v36 }
 0x109   :  { %v3486_v42 = vpop.f32.mrb[3].mxu1 }
 0x10a   :  { %v3487_v43 = vadd.f32 %v3486_v42, %v3485_v39  ;;  %v248_v44 = vadd.f32 %v3449_v41, %v175_v37 }
 0x10c   :  { %v323_v45 = vadd.f32 %v3487_v43, %v248_v44  ;;  %v4895_v44 = vld [vmem:[%s5404_s0] sm:$0xff] }
 0x122   :  { %v3520_v46 = vpop.f32.mrb[4].mxu0 }
 0x123   :  { %v3521_v47 = vpop.f32.mrb[5].mxu0 }
 0x124   :  { %v3522_v48 = vadd.f32 %v3521_v47, %v3520_v46  ;;  %v4900_v47 = vld [vmem:[%s5404_s0 + $0x8] sm:$0xff] }
 0x126   :  { %v4818_v49 = vadd.f32 %v3522_v48, %v318_v40  ;;  %v3523_v50 = vpop.f32.mrb[6].mxu0 }
 0x127   :  { %v3524_v51 = vpop.f32.mrb[7].mxu0 }
 0x128   :  { %v3525_v52 = vadd.f32 %v3524_v51, %v3523_v50  ;;  %v406_v53 = vsel %vm405_vm0, %v4818_v49, 0.0 }
 0x129   :  { %407 = vadd.xlane.f32.xlu0 %v406_v53 }
 0x12a   :  { %v4822_v54 = vadd.f32 %v3525_v52, %v323_v45 }
 0x12c   :  { %v409_v55 = vsel %vm405_vm0, %v4822_v54, 0.0 }
 0x12d   :  { %410 = vadd.xlane.f32.xlu0 %v409_v55 }
 0x1b6   :  { %v408_v56 = vpop.xlane.xlu0 %407 }
 0x1b7   :  { %v413_v57 = vmul.f32 0.03125, %v408_v56 }
 0x1b9   :  { %v415_v58 = vsub.f32 %v4818_v49, %v413_v57 }
 0x1ba   :  { %v411_v59 = vpop.xlane.xlu0 %410 }
 0x1bb   :  { %v414_v60 = vmul.f32 0.03125, %v411_v59  ;;  %v417_v61 = vmul.f32 %v415_v58, %v415_v58 }
 0x1bd   :  { %v416_v62 = vsub.f32 %v4822_v54, %v414_v60  ;;  %v419_v63 = vsel %vm405_vm0, %v417_v61, 0.0 }
 0x1be   :  { %420 = vadd.xlane.f32.xlu1 %v419_v63 }
 0x1bf   :  { %v418_v0 = vmul.f32 %v416_v62, %v416_v62 }
 0x1c1   :  { %v422_v1 = vsel %vm405_vm0, %v418_v0, 0.0 }
 0x1c2   :  { %423 = vadd.xlane.f32.xlu1 %v422_v1 }
 0x24b   :  { %v421_v8 = vpop.xlane.xlu1 %420 }
 0x24c   :  { %v425_v9 = vmul.f32 0.03125, %v421_v8 }
 0x24e   :  { %v427_v10 = vadd.f32 1e-06, %v425_v9 }
 0x24f   :  { %v424_v11 = vpop.xlane.xlu1 %423 }
 0x250   :  { %4240 = vrsqrt.f32 %v427_v10  ;;  %v426_v12 = vmul.f32 0.03125, %v424_v11 }
 0x252   :  { %v428_v13 = vadd.f32 1e-06, %v426_v12 }
 0x254   :  { %4242 = vrsqrt.f32 %v428_v13 }
 0x25a   :  { %v4241_v14 = vpop.eup %4240 }
 0x25b   :  { %v431_v16 = vmul.f32 %v4241_v14, %v415_v58 }
 0x25d   :  { %v439_v18 = vmul.f32 %v3299_v15, %v431_v16 }
 0x25e   :  { %v4243_v19 = vpop.eup %4242 }
 0x25f   :  { %v432_v20 = vmul.f32 %v4243_v19, %v416_v62  ;;  %v447_v21 = vadd.f32 %v3300_v17, %v439_v18 }
 0x261   :  { %v440_v22 = vmul.f32 %v3299_v15, %v432_v20  ;;  %3660 = vmatprep.mubr.msk.f32.mxu1 %vm405_vm0, %v447_v21 }
 0x263   :  { %v448_v23 = vadd.f32 %v3300_v17, %v440_v22 }
 0x265   :  { %3661 = vmatmul.mubr.msk.f32.vlgmr.msra.gmra.mrb[4].mxu1 %vm405_vm0, %v448_v23 }
 0x338   :  { %v3662_v25 = vpop.f32.mrb[4].mxu1 }
 0x339   :  { %v4853_v26 = vadd.f32 %v3662_v25, %v3301_v24  ;;  %v532_v27 = vpop.f32.mrb[5].mxu1 }
 0x33a   :  { %v4855_v28 = vadd.f32 %v3301_v24, %v532_v27 }
 0x33c   :  { %3667 = vmatprep.mubr.msk.f32.mxu1 %vm547_vm1, %v4855_v28  ;;  %v4861_v29 = vpack.i.bf16 %v4853_v26, %v4855_v28 }
 0x33e   :  { %4161 = vrot.lane.b32.xlu0 %v4861_v29, %s4366_s29 }
 0x342   :  { %4171 = vrot.lane.b32.xlu0 %v4861_v29, %s4367_s3 }
 0x346   :  { %745 = vrot.lane.b32.xlu0 %v4855_v28, %s4368_s26 }
 0x34a   :  { %4176 = vrot.lane.b32.xlu0 %v4861_v29, %s5390_s27  ;;  %s5411_s27 = smov 8  }
 0x34e   :  { %949 = vrot.lane.b32.xlu0 %v4855_v28, %s5388_s28 }
 0x3b0   :  { %v4162_v30 = vpop.permute.xlu0 %4161 }
 0x3b1   :  { %v4164_v31 = vunpack.i.h.bf16 %v4162_v30  ;;  %v4163_v32 = vunpack.i.l.bf16 %v4162_v30 }
 0x3b3   :  { %v3983_v34 = vpack.c.bf16 %v4164_v31, %v4163_v32 }
 0x3b4   :  { %v4172_v35 = vpop.permute.xlu0 %4171 }
 0x3b5   :  { %3985 = vmatprep.subr.msk.bf16.mxu1 %vm4875_vm2, %v3983_v34  ;;  %v4174_v60 = vunpack.i.h.bf16 %v4172_v35  ;;  %v4173_v62 = vunpack.i.l.bf16 %v4172_v35 }
 0x3b6   :  { %3988 = vmatpush3.bf16.xpose.msk.msra.mxu1 %vm4875_vm2, %v3983_v34 }
 0x3b7   :  { %v3993_v2 = vpack.c.bf16 %v4174_v60, %v4173_v62 }
 0x3b8   :  { %v4883_v36 = vpop.permute.xlu0 %745 }
 0x3bc   :  { %v4177_v37 = vpop.permute.xlu0 %4176 }
 0x3bd   :  { %v4179_v38 = vunpack.i.h.bf16 %v4177_v37  ;;  %v4178_v39 = vunpack.i.l.bf16 %v4177_v37  ;;  %3668 = vmatmul.mubr.msk.f32.vlgmr.msra.gmra.mrb[6].mxu1 %vm547_vm1, %v4853_v26 }
 0x3bf   :  { %v4003_v40 = vpack.c.bf16 %v4179_v38, %v4178_v39 }
 0x3c0   :  { %v950_v41 = vpop.permute.xlu0 %949 }
 0x3c1   :  { %4005 = vmatprep.subr.msk.bf16.mxu0 %vm4875_vm2, %v4003_v40  ;;  %3695 = vmatprep.mubr.msk.f32.mxu0 %vm547_vm1, %v950_v41 }
 0x3c2   :  { %4008 = vmatpush3.bf16.xpose.msk.msra.mxu0 %vm4875_vm2, %v4003_v40 }
 0x490   :  { %v3669_v42 = vpop.f32.mrb[6].mxu1 }
 0x491   :  { %v622_v43 = vpop.f32.mrb[7].mxu1  ;;  %v632_v45 = vmul.f32 0.35355338, %v3669_v42 }
 0x492   :  { %v631_v46 = vmul.f32 0.35355338, %v622_v43 }
 0x493   :  { %v634_v51 = vadd.f32 %v632_v45, %v4900_v47 }
 0x494   :  { %v633_v48 = vadd.f32 %v631_v46, %v4895_v44 }
 0x495   :  { %v639_v52 = vsel %vm635_vm3, %v634_v51, -inf }
 0x496   :  { %v636_v50 = vsel %vm635_vm3, %v633_v48, -inf }
 0x497   :  { %637 = vmax.xlane.f32.xlu1 %v636_v50 }
 0x49b   :  { %640 = vmax.xlane.f32.xlu1 %v639_v52 }
 0x4ac   :  { %4166 = vrot.lane.b32.xlu1 %v4861_v29, %s4371_s22 }
 0x524   :  { %v638_v53 = vpop.xlane.xlu1 %637 }
 0x525   :  { %v642_v55 = vsub.f32 %v633_v48, %v638_v53 }
 0x527   :  { %v644_v58 = vmul.f32 1.442695, %v642_v55 }
 0x528   :  { %v641_v56 = vpop.xlane.xlu1 %640 }
 0x529   :  { %v643_v57 = vsub.f32 %v634_v51, %v641_v56 }
 0x52b   :  { %v646_v59 = vmul.f32 1.442695, %v643_v57 }
 0x52c   :  { %v4167_v61 = vpop.permute.xlu1 %4166 }
 0x52d   :  { %4244 = vpow2.f32 %v646_v59  ;;  %v4169_v63 = vunpack.i.h.bf16 %v4167_v61  ;;  %v4168_v0 = vunpack.i.l.bf16 %v4167_v61 }
 0x52e   :  { %4246 = vpow2.f32 %v644_v58 }
 0x52f   :  { %v3989_v1 = vpack.c.bf16 %v4169_v63, %v4168_v0 }
 0x531   :  { %3990 = vmatprep.subr.bf16.mxu1 %v3989_v1 }
 0x532   :  { %3992 = vmatpush3.bf16.msra.mxu1 %v3989_v1 }
 0x533   :  { %3995 = vmatprep.subr.msk.bf16.mxu1 %vm4875_vm2, %v3993_v2 }
 0x537   :  { %v4245_v3 = vpop.eup %4244 }
 0x538   :  { %v651_v4 = vsel %vm635_vm3, %v4245_v3, 0.0  ;;  %v4247_v5 = vpop.eup %4246 }
 0x539   :  { %652 = vadd.xlane.f32.xlu1 %v651_v4  ;;  %v648_v6 = vsel %vm635_vm3, %v4247_v5, 0.0 }
 0x53d   :  { %649 = vadd.xlane.f32.xlu1 %v648_v6 }
 0x54e   :  { %747 = vrot.lane.b32.xlu1 %v4853_v26, %s4368_s26 }
 0x552   :  { %951 = vrot.lane.b32.xlu1 %v4853_v26, %s5388_s28  ;;  %s5412_s28 = smov 16  }
 0x5c6   :  { %v653_v7 = vpop.xlane.xlu1 %652 }
 0x5c7   :  { %4248 = vrcp.f32 %v653_v7 }
 0x5ca   :  { %v650_v8 = vpop.xlane.xlu1 %649 }
 0x5cb   :  { %4250 = vrcp.f32 %v650_v8 }
 0x5ce   :  { %v748_v9 = vpop.permute.xlu1 %747 }
 0x5d1   :  { %v4249_v11 = vpop.eup %4248 }
 0x5d2   :  { %v952_v10 = vpop.permute.xlu1 %951  ;;  %v657_v14 = vmul.f32 %v4249_v11, %v4245_v3 }
 0x5d3   :  { %3696 = vmatmul.mubr.msk.f32.vlgmr.msra.gmra.mrb[8].mxu0 %vm547_vm1, %v952_v10 }
 0x5d5   :  { %v4251_v12 = vpop.eup %4250 }
 0x5d6   :  { %v655_v13 = vmul.f32 %v4251_v12, %v4247_v5 }
 0x5d8   :  { %3674 = vmatprep.mubr.msk.f32.mxu1 %vm635_vm3, %v655_v13 }
 0x5d9   :  { %3675 = vmatmul.mubr.msk.f32.vlgmr.msra.gmra.mrb[8].mxu1 %vm635_vm3, %v657_v14 }
 0x5da   :  { %3998 = vmatpush3.bf16.xpose.msk.msra.mxu1 %vm4875_vm2, %v3993_v2  ;;  %3681 = vmatprep.mubr.msk.f32.mxu1 %vm547_vm1, %v4883_v36 }
 0x5e1   :  { %3682 = vmatmul.mubr.msk.f32.vlgmr.msra.gmra.mrb[10].mxu1 %vm547_vm1, %v748_v9 }
 0x6a6   :  { %v3697_v15 = vpop.f32.mrb[8].mxu0 }
 0x6a7   :  { %v1031_v16 = vpop.f32.mrb[9].mxu0  ;;  %v1041_v30 = vmul.f32 0.35355338, %v3697_v15 }
 0x6a8   :  { %v1040_v22 = vmul.f32 0.35355338, %v1031_v16 }
 0x6a9   :  { %v1043_v35 = vadd.f32 %v1041_v30, %v4900_v47 }
 0x6aa   :  { %v1042_v32 = vadd.f32 %v1040_v22, %v4895_v44 }
 0x6ab   :  { %v1047_v36 = vsel %vm635_vm3, %v1043_v35, -inf }
 0x6ac   :  { %v4924_v17 = vpop.f32.mrb[8].mxu1  ;;  %v1044_v34 = vsel %vm635_vm3, %v1042_v32, -inf }
 0x6ad   :  { %v4926_v18 = vpop.f32.mrb[9].mxu1 }
 0x6b4   :  { %v3683_v19 = vpop.f32.mrb[10].mxu1 }
 0x6b5   :  { %v837_v20 = vmul.f32 0.35355338, %v3683_v19  ;;  %v827_v21 = vpop.f32.mrb[11].mxu1 }
 0x6b6   :  { %v836_v23 = vmul.f32 0.35355338, %v827_v21 }
 0x6b7   :  { %v839_v24 = vadd.f32 %v837_v20, %v4900_v47 }
 0x6b8   :  { %v838_v25 = vadd.f32 %v836_v23, %v4895_v44 }
 0x6b9   :  { %v843_v27 = vsel %vm635_vm3, %v839_v24, -inf }
 0x6ba   :  { %844 = vmax.xlane.f32.xlu1 %v843_v27  ;;  %v840_v31 = vsel %vm635_vm3, %v838_v25, -inf }
 0x6bb   :  { %841 = vmax.xlane.f32.xlu0 %v840_v31 }
 0x6bf   :  { %1045 = vmax.xlane.f32.xlu0 %v1044_v34 }
 0x6c3   :  { %1048 = vmax.xlane.f32.xlu0 %v1047_v36 }
 0x747   :  { %v845_v39 = vpop.xlane.xlu1 %844 }
 0x748   :  { %v842_v37 = vpop.xlane.xlu0 %841  ;;  %v847_v42 = vsub.f32 %v839_v24, %v845_v39 }
 0x749   :  { %v846_v38 = vsub.f32 %v838_v25, %v842_v37 }
 0x74a   :  { %v850_v50 = vmul.f32 1.442695, %v847_v42 }
 0x74b   :  { %v848_v43 = vmul.f32 1.442695, %v846_v38 }
 0x74c   :  { %v1046_v40 = vpop.xlane.xlu0 %1045 }
 0x74d   :  { %v1050_v41 = vsub.f32 %v1042_v32, %v1046_v40 }
 0x74f   :  { %v1052_v45 = vmul.f32 1.442695, %v1050_v41 }
 0x750   :  { %v1049_v46 = vpop.xlane.xlu0 %1048 }
 0x751   :  { %4252 = vpow2.f32 %v1052_v45  ;;  %v1051_v48 = vsub.f32 %v1043_v35, %v1049_v46 }
 0x752   :  { %4254 = vpow2.f32 %v848_v43 }
 0x753   :  { %v1054_v51 = vmul.f32 1.442695, %v1051_v48 }
 0x755   :  { %4256 = vpow2.f32 %v1054_v51 }
 0x756   :  { %4258 = vpow2.f32 %v850_v50 }
 0x75b   :  { %v4253_v52 = vpop.eup %4252 }
 0x75c   :  { %v1056_v53 = vsel %vm635_vm3, %v4253_v52, 0.0  ;;  %v4255_v55 = vpop.eup %4254 }
 0x75d   :  { %1057 = vadd.xlane.f32.xlu0 %v1056_v53  ;;  %v852_v57 = vsel %vm635_vm3, %v4255_v55, 0.0 }
 0x75f   :  { %v4257_v56 = vpop.eup %4256 }
 0x760   :  { %v1059_v58 = vsel %vm635_vm3, %v4257_v56, 0.0  ;;  %v4259_v59 = vpop.eup %4258 }
 0x761   :  { %853 = vadd.xlane.f32.xlu0 %v852_v57  ;;  %1060 = vadd.xlane.f32.xlu1 %v1059_v58  ;;  %v855_v60 = vsel %vm635_vm3, %v4259_v59, 0.0 }
 0x765   :  { %856 = vadd.xlane.f32.xlu1 %v855_v60 }
 0x776   :  { %4186 = vrot.lane.b32.xlu1 %v4861_v29, %s5387_s24 }
 0x777   :  { %4181 = vrot.lane.b32.xlu0 %v4861_v29, %s4373_s2 }
 0x77a   :  { %4191 = vrot.lane.b32.xlu1 %v4861_v29, %s5382_s25 }
 0x77b   :  { %1155 = vrot.lane.b32.xlu0 %v4853_v26, %s5383_s4 }
 0x77e   :  { %1153 = vrot.lane.b32.xlu1 %v4855_v28, %s5383_s4 }
 0x7ea   :  { %v1058_v61 = vpop.xlane.xlu0 %1057 }
 0x7ee   :  { %v1061_v62 = vpop.xlane.xlu1 %1060  ;;  %v854_v63 = vpop.xlane.xlu0 %853 }
 0x7ef   :  { %4260 = vrcp.f32 %v854_v63  ;;  %v1389_v63 = vld [vmem:[%s5361_s8 + $0x8] sm:$0xff] }
 0x7f0   :  { %4262 = vrcp.f32 %v1058_v61 }
 0x7f2   :  { %v857_v0 = vpop.xlane.xlu1 %856  ;;  %v4182_v1 = vpop.permute.xlu0 %4181 }
 0x7f3   :  { %4264 = vrcp.f32 %v857_v0  ;;  %v4184_v2 = vunpack.i.h.bf16 %v4182_v1  ;;  %v4183_v3 = vunpack.i.l.bf16 %v4182_v1  ;;  %v1390_v0 = vld [vmem:[%s5361_s8 + $0x10] sm:$0xff] }
 0x7f4   :  { %4266 = vrcp.f32 %v1061_v62  ;;  %v1388_v62 = vld [vmem:[%s5361_s8] sm:$0xff] }
 0x7f5   :  { %v3999_v4 = vpack.c.bf16 %v4184_v2, %v4183_v3  ;;  %v4023_v1 = vpack.c.bf16 %v1389_v63, %v1388_v62  ;;  %v1391_v2 = vld [vmem:[%s5361_s8 + $0x18] sm:$0xff]  ;;  %v1672_v62 = vld [vmem:[%s5367_s14] sm:$0xff]  ;;  %v1673_v63 = vld [vmem:[%s5367_s14 + $0x8] sm:$0xff] }
 0x7f6   :  { %v4187_v5 = vpop.permute.xlu1 %4186  ;;  %v1156_v22 = vpop.permute.xlu0 %1155  ;;  %v4027_v3 = vpack.c.bf16 %v1391_v2, %v1390_v0  ;;  %v4039_v0 = vpack.c.bf16 %v1673_v63, %v1672_v62  ;;  %v1675_v2 = vld [vmem:[%s5367_s14 + $0x18] sm:$0xff] }
 0x7f7   :  { %v4189_v6 = vunpack.i.h.bf16 %v4187_v5  ;;  %v4188_v7 = vunpack.i.l.bf16 %v4187_v5  ;;  %4000 = vmatprep.subr.bf16.mxu1 %v3999_v4  ;;  %4024 = vmatprep.subr.bf16.mxu0 %v4023_v1 }
 0x7f8   :  { %4002 = vmatpush3.bf16.msra.mxu1 %v3999_v4  ;;  %4026 = vmatpush3.bf16.msra.mxu0 %v4023_v1  ;;  %v1674_v1 = vld [vmem:[%s5367_s14 + $0x10] sm:$0xff] }
 0x7f9   :  { %v4009_v26 = vpack.c.bf16 %v4189_v6, %v4188_v7  ;;  %v4261_v8 = vpop.eup %4260  ;;  %4028 = vmatprep.subr.bf16.mxu0 %v4027_v3 }
 0x7fa   :  { %v4192_v28 = vpop.permute.xlu1 %4191  ;;  %v859_v9 = vmul.f32 %v4261_v8, %v4255_v55  ;;  %v4263_v10 = vpop.eup %4262 }
 0x7fb   :  { %4010 = vmatprep.subr.bf16.mxu1 %v4009_v26  ;;  %v4194_v11 = vunpack.i.h.bf16 %v4192_v28  ;;  %v4193_v12 = vunpack.i.l.bf16 %v4192_v28  ;;  %v1063_v16 = vmul.f32 %v4263_v10, %v4253_v52 }
 0x7fc   :  { %3688 = vmatprep.mubr.msk.f32.mxu1 %vm635_vm3, %v859_v9  ;;  %4030 = vmatpush3.bf16.msra.mxu0 %v4027_v3  ;;  %v4043_v3 = vpack.c.bf16 %v1675_v2, %v1674_v1 }
 0x7fd   :  { %v4265_v13 = vpop.eup %4264  ;;  %v4013_v19 = vpack.c.bf16 %v4194_v11, %v4193_v12  ;;  %4040 = vmatprep.subr.bf16.mxu0 %v4039_v0 }
 0x7fe   :  { %v861_v14 = vmul.f32 %v4265_v13, %v4259_v59  ;;  %v4267_v15 = vpop.eup %4266  ;;  %v1154_v21 = vpop.permute.xlu1 %1153 }
 0x7ff   :  { %v1065_v20 = vmul.f32 %v4267_v15, %v4257_v56 }
 0x800   :  { %3689 = vmatmul.mubr.msk.f32.vlgmr.msra.gmra.mrb[12].mxu1 %vm635_vm3, %v861_v14 }
 0x801   :  { %4012 = vmatpush3.bf16.msra.mxu1 %v4009_v26  ;;  %3702 = vmatprep.mubr.msk.f32.mxu1 %vm635_vm3, %v1063_v16 }
 0x802   :  { %4015 = vmatprep.subr.msk.bf16.mxu1 %vm4875_vm2, %v4013_v19 }
 0x804   :  { %3703 = vmatmul.mubr.msk.f32.vlgmr.msra.gmra.mrb[14].mxu1 %vm635_vm3, %v1065_v20 }
 0x805   :  { %3709 = vmatprep.mubr.msk.f32.mxu1 %vm547_vm1, %v1154_v21 }
 0x80a   :  { %4018 = vmatpush3.bf16.xpose.msk.msra.mxu1 %vm4875_vm2, %v4013_v19 }
 0x811   :  { %3710 = vmatmul.mubr.msk.f32.vlgmr.msra.gmra.mrb[16].mxu1 %vm547_vm1, %v1156_v22 }
 0x8d3   :  { %v3690_v23 = vpop.f32.mrb[12].mxu1 }
 0x8d4   :  { %v940_v24 = vpop.f32.mrb[13].mxu1 }
 0x8d7   :  { %v3704_v25 = vpop.f32.mrb[14].mxu1 }
 0x8d8   :  { %v1144_v27 = vpop.f32.mrb[15].mxu1 }
 0x8e4   :  { %v3711_v30 = vpop.f32.mrb[16].mxu1 }
 0x8e5   :  { %v1245_v31 = vmul.f32 0.35355338, %v3711_v30  ;;  %v1235_v32 = vpop.f32.mrb[17].mxu1 }
 0x8e6   :  { %v1244_v34 = vmul.f32 0.35355338, %v1235_v32 }
 0x8e7   :  { %v1247_v35 = vadd.f32 %v1245_v31, %v4900_v47 }
 0x8e8   :  { %v1246_v36 = vadd.f32 %v1244_v34, %v4895_v44 }
 0x8e9   :  { %v1251_v37 = vsel %vm635_vm3, %v1247_v35, -inf }
 0x8ea   :  { %1252 = vmax.xlane.f32.xlu0 %v1251_v37  ;;  %v1248_v38 = vsel %vm635_vm3, %v1246_v36, -inf  ;;  %v1526_v37 = vld [vmem:[%s5365_s12] sm:$0xff] }
 0x8eb   :  { %1249 = vmax.xlane.f32.xlu1 %v1248_v38  ;;  %v1527_v38 = vld [vmem:[%s5365_s12 + $0x8] sm:$0xff] }
 0x8fc   :  { %4196 = vrot.lane.b32.xlu1 %v4861_v29, %s5381_s30  ;;  %s5391_s30 = smov 24  }
 0x900   :  { %1361 = vrot.lane.b32.xlu1 %v3690_v23, %s5385_s21 }
 0x904   :  { %1367 = vrot.lane.b32.xlu1 %v1144_v27, %s5379_s1 }
 0x908   :  { %1369 = vrot.lane.b32.xlu1 %v3704_v25, %s5379_s1  ;;  %s5410_s1 = smov 40  }
 0x977   :  { %v1253_v39 = vpop.xlane.xlu0 %1252 }
 0x978   :  { %v1255_v40 = vsub.f32 %v1247_v35, %v1253_v39  ;;  %v1250_v41 = vpop.xlane.xlu1 %1249  ;;  %v4031_v39 = vpack.c.bf16 %v1527_v38, %v1526_v37 }
 0x979   :  { %v1254_v42 = vsub.f32 %v1246_v36, %v1250_v41  ;;  %v1529_v41 = vld [vmem:[%s5365_s12 + $0x18] sm:$0xff] }
 0x97a   :  { %v1258_v43 = vmul.f32 1.442695, %v1255_v40  ;;  %v1528_v40 = vld [vmem:[%s5365_s12 + $0x10] sm:$0xff] }
 0x97b   :  { %v1256_v45 = vmul.f32 1.442695, %v1254_v42  ;;  %v4035_v42 = vpack.c.bf16 %v1529_v41, %v1528_v40 }
 0x97c   :  { %v4197_v46 = vpop.permute.xlu1 %4196 }
 0x97d   :  { %4268 = vpow2.f32 %v1256_v45  ;;  %v4199_v48 = vunpack.i.h.bf16 %v4197_v46  ;;  %v4198_v50 = vunpack.i.l.bf16 %v4197_v46 }
 0x97e   :  { %4270 = vpow2.f32 %v1258_v43 }
 0x97f   :  { %v4019_v29 = vpack.c.bf16 %v4199_v48, %v4198_v50 }
 0x980   :  { %v1362_v6 = vpop.permute.xlu1 %1361 }
 0x981   :  { %4020 = vmatprep.subr.bf16.mxu1 %v4019_v29  ;;  %v1382_v10 = vsel %vm547_vm1, %v4924_v17, %v1362_v6 }
 0x982   :  { %4022 = vmatpush3.bf16.msra.mxu1 %v4019_v29 }
 0x983   :  { %4032 = vmatprep.subr.bf16.mxu1 %v4031_v39 }
 0x984   :  { %v1368_v7 = vpop.permute.xlu1 %1367 }
 0x987   :  { %v4269_v51 = vpop.eup %4268 }
 0x988   :  { %v1260_v52 = vsel %vm635_vm3, %v4269_v51, 0.0  ;;  %v4271_v53 = vpop.eup %4270  ;;  %v1370_v8 = vpop.permute.xlu1 %1369 }
 0x989   :  { %1261 = vadd.xlane.f32.xlu0 %v1260_v52  ;;  %v1263_v55 = vsel %vm635_vm3, %v4271_v53, 0.0  ;;  %v1384_v13 = vsel %vm635_vm3, %v1382_v10, %v1370_v8  ;;  %v3331_v52 = vld [vmem:[%s5363_s10] ss:$0 sm:$0xff] }
 0x98d   :  { %1264 = vadd.xlane.f32.xlu0 %v1263_v55  ;;  %v3332_v55 = vld [vmem:[%s5364_s11] ss:$0 sm:$0xff] }
 0x9a3   :  { %1359 = vrot.lane.b32.xlu0 %v940_v24, %s5385_s21 }
 0xa16   :  { %v1262_v56 = vpop.xlane.xlu0 %1261 }
 0xa17   :  { %4272 = vrcp.f32 %v1262_v56 }
 0xa1a   :  { %v1265_v57 = vpop.xlane.xlu0 %1264 }
 0xa1b   :  { %4274 = vrcp.f32 %v1265_v57 }
 0xa1e   :  { %v1360_v26 = vpop.permute.xlu0 %1359 }
 0xa1f   :  { %v1381_v28 = vsel %vm547_vm1, %v4926_v18, %v1360_v26  ;;  %v3328_v18 = vld [vmem:[%s5362_s9] ss:$0 sm:$0xff]  ;;  %v1679_v26 = vld [vmem:[%s5367_s14 + $0x38] sm:$0xff] }
 0xa20   :  { %v1383_v11 = vsel %vm635_vm3, %v1381_v28, %v1368_v7  ;;  %v1678_v7 = vld [vmem:[%s5367_s14 + $0x30] sm:$0xff]  ;;  %v3333_v28 = vld [vmem:[%s5366_s13] ss:$0 sm:$0xff] }
 0xa21   :  { %v4273_v58 = vpop.eup %4272  ;;  %v4051_v8 = vpack.c.bf16 %v1679_v26, %v1678_v7  ;;  %v3336_v7 = vld [vmem:[%s5368_s15] ss:$0 sm:$0xff] }
 0xa22   :  { %v1267_v59 = vmul.f32 %v4273_v58, %v4269_v51 }
 0xa24   :  { %3716 = vmatprep.mubr.msk.f32.mxu1 %vm635_vm3, %v1267_v59 }
 0xa25   :  { %v4275_v60 = vpop.eup %4274 }
 0xa26   :  { %v1269_v61 = vmul.f32 %v4275_v60, %v4271_v53 }
 0xa28   :  { %3717 = vmatmul.mubr.msk.f32.vlgmr.msra.gmra.mrb[18].mxu1 %vm635_vm3, %v1269_v61 }
 0xa29   :  { %4034 = vmatpush3.bf16.msra.mxu1 %v4031_v39 }
 0xa2a   :  { %4036 = vmatprep.subr.bf16.mxu1 %v4035_v42 }
 0xa2d   :  { %4038 = vmatpush3.bf16.msra.mxu1 %v4035_v42 }
 0xafb   :  { %v3718_v4 = vpop.f32.mrb[18].mxu1 }
 0xafc   :  { %1377 = vrot.lane.b32.xlu1 %v3718_v4, %s5391_s30  ;;  %v1348_v5 = vpop.f32.mrb[19].mxu1  ;;  %v1676_v4 = vld [vmem:[%s5367_s14 + $0x20] sm:$0xff] }
 0xafd   :  { %1375 = vrot.lane.b32.xlu0 %v1348_v5, %s5391_s30  ;;  %v1677_v5 = vld [vmem:[%s5367_s14 + $0x28] sm:$0xff] }
 0xafe   :  { %v4047_v6 = vpack.c.bf16 %v1677_v5, %v1676_v4 }
 0xb6e   :  { %v1378_v9 = vpop.permute.xlu1 %1377 }
 0xb6f   :  { %v1376_v12 = vpop.permute.xlu0 %1375  ;;  %v1387_v15 = vsel %vm1385_vm4, %v1384_v13, %v1378_v9 }
 0xb70   :  { %v1386_v14 = vsel %vm1385_vm4, %v1383_v11, %v1376_v12 }
 0xb71   :  { %3727 = vmatprep.mubr.msk.f32.mxu0 %vm405_vm0, %v1386_v14 }
 0xb72   :  { %3728 = vmatmul.mubr.msk.f32.vlgmr.msra.gmra.mrb[10].mxu0 %vm405_vm0, %v1387_v15 }
 0xb73   :  { %4042 = vmatpush3.bf16.msra.mxu0 %v4039_v0 }
 0xb74   :  { %4044 = vmatprep.subr.bf16.mxu0 %v4043_v3 }
 0xb77   :  { %4046 = vmatpush3.bf16.msra.mxu0 %v4043_v3 }
 0xb78   :  { %4048 = vmatprep.subr.bf16.mxu0 %v4047_v6 }
 0xb7b   :  { %4050 = vmatpush3.bf16.msra.mxu0 %v4047_v6 }
 0xb7c   :  { %4052 = vmatprep.subr.bf16.mxu0 %v4051_v8 }
 0xb7f   :  { %4054 = vmatpush3.bf16.msra.mxu0 %v4051_v8 }
 0xc45   :  { %v3729_v16 = vpop.f32.mrb[10].mxu0 }
 0xc46   :  { %v1477_v19 = vadd.f32 %v3729_v16, %v3328_v18  ;;  %v1471_v17 = vpop.f32.mrb[11].mxu0 }
 0xc47   :  { %v1472_v20 = vadd.f32 %v3328_v18, %v1471_v17 }
 0xc48   :  { %v5002_v21 = vadd.f32 %v1477_v19, %v4822_v54 }
 0xc49   :  { %v5005_v22 = vadd.f32 %v1472_v20, %v4818_v49 }
 0xc4a   :  { %v1487_v23 = vsel %vm405_vm0, %v5002_v21, 0.0 }
 0xc4b   :  { %1488 = vadd.xlane.f32.xlu1 %v1487_v23  ;;  %v1484_v24 = vsel %vm405_vm0, %v5005_v22, 0.0 }
 0xc4c   :  { %1485 = vadd.xlane.f32.xlu0 %v1484_v24 }
 0xcd8   :  { %v1489_v25 = vpop.xlane.xlu1 %1488 }
 0xcd9   :  { %v1491_v27 = vmul.f32 0.03125, %v1489_v25  ;;  %v1486_v30 = vpop.xlane.xlu0 %1485 }
 0xcda   :  { %v1490_v31 = vmul.f32 0.03125, %v1486_v30 }
 0xcdb   :  { %v1493_v32 = vsub.f32 %v5002_v21, %v1491_v27 }
 0xcdc   :  { %v1492_v54 = vsub.f32 %v5005_v22, %v1490_v31 }
 0xcdd   :  { %v1495_v35 = vmul.f32 %v1493_v32, %v1493_v32 }
 0xcde   :  { %v1494_v34 = vmul.f32 %v1492_v54, %v1492_v54 }
 0xcdf   :  { %v1499_v36 = vsel %vm405_vm0, %v1495_v35, 0.0 }
 0xce0   :  { %v1496_v49 = vsel %vm405_vm0, %v1494_v34, 0.0 }
 0xce1   :  { %1497 = vadd.xlane.f32.xlu0 %v1496_v49 }
 0xce5   :  { %1500 = vadd.xlane.f32.xlu0 %v1499_v36 }
 0xd6e   :  { %v1498_v43 = vpop.xlane.xlu0 %1497 }
 0xd6f   :  { %v1502_v45 = vmul.f32 0.03125, %v1498_v43 }
 0xd71   :  { %v1504_v46 = vadd.f32 1e-06, %v1502_v45 }
 0xd72   :  { %v1501_v48 = vpop.xlane.xlu0 %1500 }
 0xd73   :  { %4276 = vrsqrt.f32 %v1504_v46  ;;  %v1503_v50 = vmul.f32 0.03125, %v1501_v48 }
 0xd75   :  { %v1505_v29 = vadd.f32 1e-06, %v1503_v50 }
 0xd77   :  { %4278 = vrsqrt.f32 %v1505_v29 }
 0xd7d   :  { %v4277_v51 = vpop.eup %4276 }
 0xd7e   :  { %v1508_v53 = vmul.f32 %v4277_v51, %v1492_v54 }
 0xd80   :  { %v1516_v56 = vmul.f32 %v3331_v52, %v1508_v53 }
 0xd81   :  { %v4279_v57 = vpop.eup %4278 }
 0xd82   :  { %v1509_v58 = vmul.f32 %v4279_v57, %v1493_v32  ;;  %v1524_v59 = vadd.f32 %v3332_v55, %v1516_v56 }
 0xd84   :  { %v1517_v60 = vmul.f32 %v3331_v52, %v1509_v58  ;;  %3738 = vmatprep.mubr.msk.f32.mxu1 %vm405_vm0, %v1524_v59  ;;  %v4380_v59 = vmov 1.0  }
 0xd86   :  { %v1525_v61 = vadd.f32 %v3332_v55, %v1517_v60 }
 0xd88   :  { %3739 = vmatmul.mubr.msk.f32.vlgmr.msra.gmra.mrb[20].mxu1 %vm405_vm0, %v1525_v61 }
 0xe5b   :  { %v3740_v9 = vpop.f32.mrb[20].mxu1 }
 0xe5c   :  { %v1615_v10 = vadd.f32 %v3740_v9, %v3333_v28  ;;  %v1609_v11 = vpop.f32.mrb[21].mxu1 }
 0xe5d   :  { %v1610_v12 = vadd.f32 %v3333_v28, %v1609_v11 }
 0xe5e   :  { %v1621_v13 = vmul.f32 0.70710677, %v1615_v10  ;;  %v1619_v4 = vmul.f32 0.5, %v1615_v10 }
 0xe5f   :  { %v1620_v14 = vmul.f32 0.70710677, %v1610_v12  ;;  %v1618_v2 = vmul.f32 0.5, %v1610_v12 }
 0xe60   :  { %v1627_v15 = vand.u32 2147483647, %v1621_v13  ;;  %vm1623_vm5 = vcmp.lt.f32.partialorder %v1621_v13, 0.0 }
 0xe61   :  { %v1626_v18 = vand.u32 2147483647, %v1620_v14  ;;  %vm1622_vm6 = vcmp.lt.f32.partialorder %v1620_v14, 0.0  ;;  %v1625_v60 = vsel %vm1623_vm5, -1.0, %v4380_v59 }
 0xe62   :  { %v1629_v16 = vmul.f32 0.3275911, %v1627_v15  ;;  %v1655_v23 = vsub.f32 0.0, %v1627_v15  ;;  %v1624_v63 = vsel %vm1622_vm6, -1.0, %v4380_v59 }
 0xe63   :  { %v1628_v19 = vmul.f32 0.3275911, %v1626_v18  ;;  %v1654_v24 = vsub.f32 0.0, %v1626_v18 }
 0xe64   :  { %v1631_v17 = vadd.f32 1.0, %v1629_v16  ;;  %v1657_v27 = vmul.f32 %v1655_v23, %v1627_v15 }
 0xe65   :  { %v1630_v20 = vadd.f32 1.0, %v1628_v19  ;;  %v1656_v32 = vmul.f32 %v1654_v24, %v1626_v18  ;;  %v3343_v24 = vld [vmem:[%s5359_s6 + $0x20] sm:$0xff] }
 0xe66   :  { %4280 = vrcp.f32 %v1631_v17  ;;  %v1660_v49 = vmul.f32 1.442695, %v1657_v27 }
 0xe67   :  { %4282 = vrcp.f32 %v1630_v20  ;;  %v1658_v37 = vmul.f32 1.442695, %v1656_v32 }
 0xe68   :  { %4284 = vpow2.f32 %v1660_v49 }
 0xe69   :  { %4286 = vpow2.f32 %v1658_v37 }
 0xe70   :  { %v4281_v25 = vpop.eup %4280 }
 0xe71   :  { %v4283_v30 = vpop.eup %4282  ;;  %v1637_v31 = vmul.f32 1.0614054, %v4281_v25 }
 0xe72   :  { %v1636_v54 = vmul.f32 1.0614054, %v4283_v30  ;;  %v4285_v52 = vpop.eup %4284 }
 0xe73   :  { %v1639_v34 = vadd.f32 -1.4531521, %v1637_v31  ;;  %v4287_v55 = vpop.eup %4286  ;;  %v3346_v31 = vld [vmem:[%s5359_s6 + $0x38] sm:$0xff] }
 0xe74   :  { %v1638_v35 = vadd.f32 -1.4531521, %v1636_v54 }
 0xe75   :  { %v1641_v36 = vmul.f32 %v4281_v25, %v1639_v34 }
 0xe76   :  { %v1640_v38 = vmul.f32 %v4283_v30, %v1638_v35 }
 0xe77   :  { %v1643_v39 = vadd.f32 1.4214138, %v1641_v36 }
 0xe78   :  { %v1642_v40 = vadd.f32 1.4214138, %v1640_v38 }
 0xe79   :  { %v1645_v41 = vmul.f32 %v4281_v25, %v1643_v39  ;;  %v3341_v39 = vld [vmem:[%s5401_s23 + $0x1] ss:$0 sm:$0xff]  ;;  %s5413_s23 = smov 24  }
 0xe7a   :  { %v1644_v42 = vmul.f32 %v4283_v30, %v1642_v40 }
 0xe7b   :  { %v1647_v43 = vadd.f32 -0.28449672, %v1645_v41 }
 0xe7c   :  { %v1646_v45 = vadd.f32 -0.28449672, %v1644_v42 }
 0xe7d   :  { %v1649_v46 = vmul.f32 %v4281_v25, %v1647_v43  ;;  %v3342_v43 = vld [vmem:[%s5358_s5 + $0x1] ss:$0 sm:$0xff]  ;;  %s5405_s5 = smov 80  }
 0xe7e   :  { %v1648_v48 = vmul.f32 %v4283_v30, %v1646_v45 }
 0xe7f   :  { %v1651_v50 = vadd.f32 0.2548296, %v1649_v46 }
 0xe80   :  { %v1650_v29 = vadd.f32 0.2548296, %v1648_v48 }
 0xe81   :  { %v1653_v51 = vmul.f32 %v4281_v25, %v1651_v50  ;;  %v3344_v25 = vld [vmem:[%s5359_s6 + $0x28] sm:$0xff] }
 0xe82   :  { %v1652_v53 = vmul.f32 %v4283_v30, %v1650_v29  ;;  %v4055_v27 = vpack.c.bf16 %v3344_v25, %v3343_v24  ;;  %v3345_v30 = vld [vmem:[%s5359_s6 + $0x30] sm:$0xff]  ;;  %v3348_v29 = vld [vmem:[%s5360_s7 + $0x1] ss:$0 sm:$0xff]  ;;  %s5406_s7 = smov 112  }
 0xe83   :  { %v1663_v56 = vmul.f32 %v4285_v52, %v1653_v51  ;;  %v4059_v32 = vpack.c.bf16 %v3346_v31, %v3345_v30 }
 0xe84   :  { %v1662_v57 = vmul.f32 %v4287_v55, %v1652_v53  ;;  %4056 = vmatprep.subr.bf16.mxu1 %v4055_v27 }
 0xe85   :  { %v1665_v58 = vsub.f32 1.0, %v1663_v56  ;;  %4058 = vmatpush3.bf16.msra.mxu1 %v4055_v27 }
 0xe86   :  { %v1664_v61 = vsub.f32 1.0, %v1662_v57  ;;  %4060 = vmatprep.subr.bf16.mxu1 %v4059_v32 }
 0xe87   :  { %v1667_v62 = vmul.f32 %v1665_v58, %v1625_v60 }
 0xe88   :  { %v1666_v0 = vmul.f32 %v1664_v61, %v1624_v63 }
 0xe89   :  { %v1669_v1 = vadd.f32 1.0, %v1667_v62  ;;  %4062 = vmatpush3.bf16.msra.mxu1 %v4059_v32 }
 0xe8a   :  { %v1668_v3 = vadd.f32 1.0, %v1666_v0 }
 0xe8b   :  { %v1671_v6 = vmul.f32 %v1669_v1, %v1619_v4 }
 0xe8c   :  { %v1670_v5 = vmul.f32 %v1668_v3, %v1618_v2 }
 0xe8e   :  { %3757 = vmatprep.mubr.msk.f32.mxu0 %vm1687_vm7, %v1670_v5 }
 0xe8f   :  { %3758 = vmatmul.mubr.msk.f32.vlgmr.msra.gmra.mrb[12].mxu0 %vm1687_vm7, %v1671_v6 }
 0xf62   :  { %v3759_v26 = vpop.f32.mrb[12].mxu0 }
 0xf63   :  { %v1766_v8 = vadd.f32 %v3759_v26, %v3336_v7  ;;  %v1760_v28 = vpop.f32.mrb[13].mxu0 }
 0xf64   :  { %v1761_v9 = vadd.f32 %v3336_v7, %v1760_v28 }
 0xf65   :  { %v5070_v11 = vadd.f32 %v1766_v8, %v5002_v21 }
 0xf66   :  { %v5073_v10 = vadd.f32 %v1761_v9, %v5005_v22 }
 0xf67   :  { %v1778_v12 = vsel %vm405_vm0, %v5070_v11, 0.0 }
 0xf68   :  { %1779 = vadd.xlane.f32.xlu1 %v1778_v12  ;;  %v1775_v13 = vsel %vm405_vm0, %v5073_v10, 0.0 }
 0xf69   :  { %1776 = vadd.xlane.f32.xlu0 %v1775_v13 }
 0xff5   :  { %v1780_v14 = vpop.xlane.xlu1 %1779 }
 0xff6   :  { %v1782_v15 = vmul.f32 0.03125, %v1780_v14  ;;  %v1777_v18 = vpop.xlane.xlu0 %1776 }
 0xff7   :  { %v1781_v16 = vmul.f32 0.03125, %v1777_v18 }
 0xff8   :  { %v1784_v19 = vsub.f32 %v5070_v11, %v1782_v15 }
 0xff9   :  { %v1783_v21 = vsub.f32 %v5073_v10, %v1781_v16 }
 0xffa   :  { %v1786_v17 = vmul.f32 %v1784_v19, %v1784_v19 }
 0xffb   :  { %v1785_v20 = vmul.f32 %v1783_v21, %v1783_v21 }
 0xffc   :  { %v1790_v22 = vsel %vm405_vm0, %v1786_v17, 0.0 }
 0xffd   :  { %1791 = vadd.xlane.f32.xlu1 %v1790_v22  ;;  %v1787_v23 = vsel %vm405_vm0, %v1785_v20, 0.0 }
 0xffe   :  { %1788 = vadd.xlane.f32.xlu0 %v1787_v23 }
0x108a   :  { %v1792_v54 = vpop.xlane.xlu1 %1791 }
0x108b   :  { %v1794_v34 = vmul.f32 0.03125, %v1792_v54  ;;  %v1789_v49 = vpop.xlane.xlu0 %1788 }
0x108c   :  { %v1793_v35 = vmul.f32 0.03125, %v1789_v49 }
0x108d   :  { %v1796_v36 = vadd.f32 1e-06, %v1794_v34 }
0x108e   :  { %v1795_v37 = vadd.f32 1e-06, %v1793_v35 }
0x108f   :  { %4288 = vrsqrt.f32 %v1796_v36 }
0x1090   :  { %4290 = vrsqrt.f32 %v1795_v37 }
0x1099   :  { %v4289_v38 = vpop.eup %4288 }
0x109a   :  { %v4291_v40 = vpop.eup %4290  ;;  %v1800_v41 = vmul.f32 %v4289_v38, %v1784_v19 }
0x109b   :  { %v1799_v42 = vmul.f32 %v4291_v40, %v1783_v21 }
0x109c   :  { %v1808_v45 = vmul.f32 %v3341_v39, %v1800_v41 }
0x109d   :  { %v1807_v46 = vmul.f32 %v3341_v39, %v1799_v42 }
0x109e   :  { %v1816_v50 = vadd.f32 %v3342_v43, %v1808_v45 }
0x109f   :  { %v1815_v48 = vadd.f32 %v3342_v43, %v1807_v46 }
0x10a1   :  { %3768 = vmatprep.mubr.msk.f32.mxu1 %vm405_vm0, %v1815_v48 }
0x10a2   :  { %3769 = vmatmul.mubr.msk.f32.vlgmr.msra.gmra.mrb[22].mxu1 %vm405_vm0, %v1816_v50 }
0x1175   :  { %v3770_v51 = vpop.f32.mrb[22].mxu1 }
0x1176   :  { %v5106_v52 = vadd.f32 %v3770_v51, %v3348_v29  ;;  %v1902_v53 = vpop.f32.mrb[23].mxu1 }
0x1177   :  { %v5108_v55 = vadd.f32 %v3348_v29, %v1902_v53 }
0x1179   :  { %3775 = vmatprep.mubr.msk.f32.mxu1 %vm547_vm1, %v5108_v55  ;;  %v5114_v56 = vpack.i.bf16 %v5106_v52, %v5108_v55 }
0x117b   :  { %4206 = vrot.lane.b32.xlu1 %v5114_v56, %s4367_s3  ;;  %4201 = vrot.lane.b32.xlu0 %v5114_v56, %s4366_s29 }
0x117f   :  { %2113 = vrot.lane.b32.xlu1 %v5108_v55, %s4368_s26 }
0x1183   :  { %2115 = vrot.lane.b32.xlu1 %v5106_v52, %s4368_s26 }
0x11ed   :  { %v4207_v57 = vpop.permute.xlu1 %4206  ;;  %v4202_v58 = vpop.permute.xlu0 %4201 }
0x11ee   :  { %v4209_v60 = vunpack.i.h.bf16 %v4207_v57  ;;  %v4208_v61 = vunpack.i.l.bf16 %v4207_v57  ;;  %v4204_v62 = vunpack.i.h.bf16 %v4202_v58  ;;  %v4203_v63 = vunpack.i.l.bf16 %v4202_v58 }
0x11f0   :  { %v4063_v0 = vpack.c.bf16 %v4204_v62, %v4203_v63  ;;  %v4073_v1 = vpack.c.bf16 %v4209_v60, %v4208_v61 }
0x11f1   :  { %v2114_v2 = vpop.permute.xlu1 %2113 }
0x11f2   :  { %4065 = vmatprep.subr.msk.bf16.mxu1 %vm4875_vm2, %v4063_v0 }
0x11f3   :  { %4068 = vmatpush3.bf16.xpose.msk.msra.mxu1 %vm4875_vm2, %v4063_v0 }
0x11f4   :  { %4075 = vmatprep.subr.msk.bf16.mxu1 %vm4875_vm2, %v4073_v1 }
0x11f5   :  { %v2116_v3 = vpop.permute.xlu1 %2115 }
0x11fa   :  { %3776 = vmatmul.mubr.msk.f32.vlgmr.msra.gmra.mrb[24].mxu1 %vm547_vm1, %v5106_v52 }
0x11fb   :  { %4078 = vmatpush3.bf16.xpose.msk.msra.mxu1 %vm4875_vm2, %v4073_v1  ;;  %3789 = vmatprep.mubr.msk.f32.mxu1 %vm547_vm1, %v2114_v2 }
0x1202   :  { %3790 = vmatmul.mubr.msk.f32.vlgmr.msra.gmra.mrb[26].mxu1 %vm547_vm1, %v2116_v3 }
0x12cd   :  { %v3777_v4 = vpop.f32.mrb[24].mxu1 }
0x12ce   :  { %v2001_v5 = vmul.f32 0.35355338, %v3777_v4  ;;  %v1991_v6 = vpop.f32.mrb[25].mxu1 }
0x12cf   :  { %v2000_v7 = vmul.f32 0.35355338, %v1991_v6 }
0x12d0   :  { %v2003_v26 = vadd.f32 %v2001_v5, %v4900_v47 }
0x12d1   :  { %v2002_v8 = vadd.f32 %v2000_v7, %v4895_v44 }
0x12d2   :  { %v2007_v28 = vsel %vm635_vm3, %v2003_v26, -inf }
0x12d3   :  { %2008 = vmax.xlane.f32.xlu1 %v2007_v28  ;;  %v2004_v9 = vsel %vm635_vm3, %v2002_v8, -inf }
0x12d4   :  { %2005 = vmax.xlane.f32.xlu0 %v2004_v9 }
0x12d5   :  { %v3791_v12 = vpop.f32.mrb[26].mxu1 }
0x12d6   :  { %v2195_v13 = vpop.f32.mrb[27].mxu1  ;;  %v2205_v14 = vmul.f32 0.35355338, %v3791_v12 }
0x12d7   :  { %v2204_v15 = vmul.f32 0.35355338, %v2195_v13 }
0x12d8   :  { %v2207_v19 = vadd.f32 %v2205_v14, %v4900_v47 }
0x12d9   :  { %v2206_v18 = vadd.f32 %v2204_v15, %v4895_v44 }
0x12da   :  { %v2211_v21 = vsel %vm635_vm3, %v2207_v19, -inf }
0x12db   :  { %v2208_v16 = vsel %vm635_vm3, %v2206_v18, -inf }
0x12dc   :  { %2209 = vmax.xlane.f32.xlu0 %v2208_v16  ;;  %v4340_v16 = vld [vmem:[%s5404_s0 + $0x8] sm:$0xff] }
0x12e0   :  { %2212 = vmax.xlane.f32.xlu0 %v2211_v21  ;;  %v4341_v21 = vld [vmem:[%s5404_s0] sm:$0xff]  ;;  %s5409_s0 = smov 72  }
0x1360   :  { %v2009_v17 = vpop.xlane.xlu1 %2008 }
0x1361   :  { %v2011_v20 = vsub.f32 %v2003_v26, %v2009_v17  ;;  %v2006_v22 = vpop.xlane.xlu0 %2005 }
0x1362   :  { %v2010_v23 = vsub.f32 %v2002_v8, %v2006_v22 }
0x1363   :  { %v2014_v24 = vmul.f32 1.442695, %v2011_v20 }
0x1364   :  { %v2012_v25 = vmul.f32 1.442695, %v2010_v23 }
0x1365   :  { %4292 = vpow2.f32 %v2014_v24 }
0x1366   :  { %4294 = vpow2.f32 %v2012_v25 }
0x1369   :  { %v2210_v27 = vpop.xlane.xlu0 %2209 }
0x136a   :  { %v2214_v30 = vsub.f32 %v2206_v18, %v2210_v27 }
0x136c   :  { %v2216_v31 = vmul.f32 1.442695, %v2214_v30 }
0x136d   :  { %v2213_v44 = vpop.xlane.xlu0 %2212 }
0x136e   :  { %4296 = vpow2.f32 %v2216_v31  ;;  %v2215_v32 = vsub.f32 %v2207_v19, %v2213_v44 }
0x136f   :  { %v4293_v54 = vpop.eup %4292 }
0x1370   :  { %v4295_v47 = vpop.eup %4294  ;;  %v2218_v34 = vmul.f32 1.442695, %v2215_v32  ;;  %v2019_v49 = vsel %vm635_vm3, %v4293_v54, 0.0 }
0x1371   :  { %2020 = vadd.xlane.f32.xlu1 %v2019_v49  ;;  %v2016_v35 = vsel %vm635_vm3, %v4295_v47, 0.0 }
0x1372   :  { %4298 = vpow2.f32 %v2218_v34  ;;  %2017 = vadd.xlane.f32.xlu0 %v2016_v35 }
0x1378   :  { %v4297_v36 = vpop.eup %4296 }
0x1379   :  { %v2220_v37 = vsel %vm635_vm3, %v4297_v36, 0.0 }
0x137a   :  { %2221 = vadd.xlane.f32.xlu0 %v2220_v37 }
0x137c   :  { %v4299_v38 = vpop.eup %4298 }
0x137d   :  { %v2223_v39 = vsel %vm635_vm3, %v4299_v38, 0.0 }
0x137e   :  { %2224 = vadd.xlane.f32.xlu1 %v2223_v39 }
0x138f   :  { %4216 = vrot.lane.b32.xlu1 %v5114_v56, %s4373_s2  ;;  %s5408_s2 = smov 104  }
0x1390   :  { %4211 = vrot.lane.b32.xlu0 %v5114_v56, %s4371_s22  ;;  %s5407_s22 = smov 48  }
0x1393   :  { %4221 = vrot.lane.b32.xlu1 %v5114_v56, %s5405_s5 }
0x1394   :  { %2319 = vrot.lane.b32.xlu0 %v5106_v52, %s5406_s7 }
0x1397   :  { %2317 = vrot.lane.b32.xlu1 %v5108_v55, %s5406_s7 }
0x13fe   :  { %v2021_v41 = vpop.xlane.xlu1 %2020 }
0x13ff   :  { %v2018_v40 = vpop.xlane.xlu0 %2017 }
0x1400   :  { %4300 = vrcp.f32 %v2018_v40 }
0x1401   :  { %4302 = vrcp.f32 %v2021_v41 }
0x1407   :  { %v2222_v42 = vpop.xlane.xlu0 %2221 }
0x1408   :  { %4304 = vrcp.f32 %v2222_v42 }
0x140a   :  { %v4301_v43 = vpop.eup %4300 }
0x140b   :  { %v2225_v45 = vpop.xlane.xlu1 %2224  ;;  %v4212_v46 = vpop.permute.xlu0 %4211  ;;  %v2023_v48 = vmul.f32 %v4301_v43, %v4295_v47 }
0x140c   :  { %4306 = vrcp.f32 %v2225_v45  ;;  %v4214_v50 = vunpack.i.h.bf16 %v4212_v46  ;;  %v4213_v29 = vunpack.i.l.bf16 %v4212_v46  ;;  %v4303_v53 = vpop.eup %4302 }
0x140d   :  { %3782 = vmatprep.mubr.msk.f32.mxu0 %vm635_vm3, %v2023_v48  ;;  %v2025_v62 = vmul.f32 %v4303_v53, %v4293_v54 }
0x140e   :  { %v4069_v51 = vpack.c.bf16 %v4214_v50, %v4213_v29 }
0x140f   :  { %v4217_v57 = vpop.permute.xlu1 %4216  ;;  %v2320_v26 = vpop.permute.xlu0 %2319 }
0x1410   :  { %v4219_v58 = vunpack.i.h.bf16 %v4217_v57  ;;  %v4218_v60 = vunpack.i.l.bf16 %v4217_v57  ;;  %4070 = vmatprep.subr.bf16.mxu0 %v4069_v51 }
0x1411   :  { %4072 = vmatpush3.bf16.msra.mxu0 %v4069_v51 }
0x1412   :  { %v4305_v61 = vpop.eup %4304  ;;  %v4079_v63 = vpack.c.bf16 %v4219_v58, %v4218_v60 }
0x1413   :  { %v4222_v0 = vpop.permute.xlu1 %4221  ;;  %v2227_v1 = vmul.f32 %v4305_v61, %v4297_v36 }
0x1414   :  { %v4224_v2 = vunpack.i.h.bf16 %v4222_v0  ;;  %v4223_v3 = vunpack.i.l.bf16 %v4222_v0  ;;  %3783 = vmatmul.mubr.msk.f32.vlgmr.msra.gmra.mrb[14].mxu0 %vm635_vm3, %v2025_v62  ;;  %4080 = vmatprep.subr.bf16.mxu0 %v4079_v63 }
0x1415   :  { %4082 = vmatpush3.bf16.msra.mxu0 %v4079_v63  ;;  %3796 = vmatprep.mubr.msk.f32.mxu0 %vm635_vm3, %v2227_v1 }
0x1416   :  { %v4307_v4 = vpop.eup %4306  ;;  %v4083_v5 = vpack.c.bf16 %v4224_v2, %v4223_v3 }
0x1417   :  { %v2229_v6 = vmul.f32 %v4307_v4, %v4299_v38  ;;  %v2318_v7 = vpop.permute.xlu1 %2317 }
0x1418   :  { %4085 = vmatprep.subr.msk.bf16.mxu0 %vm4875_vm2, %v4083_v5 }
0x1419   :  { %3797 = vmatmul.mubr.msk.f32.vlgmr.msra.gmra.mrb[16].mxu0 %vm635_vm3, %v2229_v6 }
0x141a   :  { %3803 = vmatprep.mubr.msk.f32.mxu0 %vm547_vm1, %v2318_v7 }
0x141e   :  { %4088 = vmatpush3.bf16.xpose.msk.msra.mxu0 %vm4875_vm2, %v4083_v5 }
0x1425   :  { %3804 = vmatmul.mubr.msk.f32.vlgmr.msra.gmra.mrb[18].mxu0 %vm547_vm1, %v2320_v26 }
0x14e7   :  { %v5168_v8 = vpop.f32.mrb[14].mxu0 }
0x14e8   :  { %v5170_v28 = vpop.f32.mrb[15].mxu0 }
0x14ec   :  { %v5172_v9 = vpop.f32.mrb[16].mxu0 }
0x14ed   :  { %v5174_v12 = vpop.f32.mrb[17].mxu0 }
0x14f8   :  { %v3805_v13 = vpop.f32.mrb[18].mxu0 }
0x14f9   :  { %v2409_v14 = vmul.f32 0.35355338, %v3805_v13  ;;  %v2399_v15 = vpop.f32.mrb[19].mxu0 }
0x14fa   :  { %v2408_v18 = vmul.f32 0.35355338, %v2399_v15 }
0x14fb   :  { %v2411_v19 = vadd.f32 %v4340_v16, %v2409_v14 }
0x14fc   :  { %v2410_v17 = vadd.f32 %v4341_v21, %v2408_v18 }
0x14fd   :  { %v2415_v20 = vsel %vm635_vm3, %v2411_v19, -inf }
0x14fe   :  { %2416 = vmax.xlane.f32.xlu0 %v2415_v20  ;;  %v2412_v22 = vsel %vm635_vm3, %v2410_v17, -inf  ;;  %v3375_v20 = vld [vmem:[%s5361_s8 + $0x20] sm:$0xff] }
0x14ff   :  { %2413 = vmax.xlane.f32.xlu1 %v2412_v22  ;;  %v3377_v22 = vld [vmem:[%s5361_s8 + $0x30] sm:$0xff] }
0x1510   :  { %4226 = vrot.lane.b32.xlu1 %v5114_v56, %s5407_s22 }
0x1514   :  { %2521 = vrot.lane.b32.xlu1 %v5108_v55, %s5408_s2 }
0x1518   :  { %2523 = vrot.lane.b32.xlu1 %v5106_v52, %s5408_s2 }
0x158b   :  { %v2417_v23 = vpop.xlane.xlu0 %2416 }
0x158c   :  { %v2419_v24 = vsub.f32 %v2411_v19, %v2417_v23  ;;  %v2414_v25 = vpop.xlane.xlu1 %2413 }
0x158d   :  { %v2418_v27 = vsub.f32 %v2410_v17, %v2414_v25 }
0x158e   :  { %v2422_v30 = vmul.f32 1.442695, %v2419_v24  ;;  %v3378_v24 = vld [vmem:[%s5361_s8 + $0x38] sm:$0xff] }
0x158f   :  { %v2420_v31 = vmul.f32 1.442695, %v2418_v27  ;;  %v4107_v25 = vpack.c.bf16 %v3378_v24, %v3377_v22  ;;  %v3398_v22 = vld [vmem:[%s5367_s14 + $0x58] sm:$0xff]  ;;  %v3399_v24 = vld [vmem:[%s5367_s14 + $0x60] sm:$0xff] }
0x1590   :  { %4308 = vpow2.f32 %v2422_v30  ;;  %v4227_v44 = vpop.permute.xlu1 %4226 }
0x1591   :  { %v4229_v32 = vunpack.i.h.bf16 %v4227_v44  ;;  %v4228_v54 = vunpack.i.l.bf16 %v4227_v44  ;;  %4310 = vpow2.f32 %v2420_v31 }
0x1593   :  { %v4089_v47 = vpack.c.bf16 %v4229_v32, %v4228_v54 }
0x1594   :  { %v2522_v46 = vpop.permute.xlu1 %2521 }
0x1595   :  { %4090 = vmatprep.subr.bf16.mxu1 %v4089_v47 }
0x1596   :  { %4092 = vmatpush3.bf16.msra.mxu1 %v4089_v47 }
0x1598   :  { %v2524_v48 = vpop.permute.xlu1 %2523 }
0x159a   :  { %v4309_v34 = vpop.eup %4308 }
0x159b   :  { %v2427_v55 = vsel %vm635_vm3, %v4309_v34, 0.0  ;;  %v4311_v49 = vpop.eup %4310 }
0x159c   :  { %2428 = vadd.xlane.f32.xlu0 %v2427_v55  ;;  %v2424_v52 = vsel %vm635_vm3, %v4311_v49, 0.0 }
0x15a0   :  { %2425 = vadd.xlane.f32.xlu0 %v2424_v52 }
0x15b6   :  { %4231 = vrot.lane.b32.xlu0 %v5114_v56, %s5409_s0 }
0x1629   :  { %v2429_v35 = vpop.xlane.xlu0 %2428 }
0x162a   :  { %4312 = vrcp.f32 %v2429_v35 }
0x162d   :  { %v2426_v36 = vpop.xlane.xlu0 %2425 }
0x162e   :  { %4314 = vrcp.f32 %v2426_v36 }
0x1631   :  { %v4232_v37 = vpop.permute.xlu0 %4231 }
0x1632   :  { %v4234_v38 = vunpack.i.h.bf16 %v4232_v37  ;;  %v4233_v39 = vunpack.i.l.bf16 %v4232_v37 }
0x1634   :  { %v4093_v40 = vpack.c.bf16 %v4234_v38, %v4233_v39  ;;  %v4313_v41 = vpop.eup %4312 }
0x1635   :  { %v2433_v45 = vmul.f32 %v4313_v41, %v4309_v34 }
0x1636   :  { %4095 = vmatprep.subr.msk.bf16.mxu1 %vm4875_vm2, %v4093_v40 }
0x1638   :  { %v4315_v42 = vpop.eup %4314 }
0x1639   :  { %v2431_v43 = vmul.f32 %v4315_v42, %v4311_v49 }
0x163b   :  { %3810 = vmatprep.mubr.msk.f32.mxu1 %vm635_vm3, %v2431_v43 }
0x163c   :  { %3811 = vmatmul.mubr.msk.f32.vlgmr.msra.gmra.mrb[28].mxu1 %vm635_vm3, %v2433_v45 }
0x163d   :  { %4098 = vmatpush3.bf16.xpose.msk.msra.mxu1 %vm4875_vm2, %v4093_v40  ;;  %3817 = vmatprep.mubr.msk.f32.mxu1 %vm547_vm1, %v2522_v46 }
0x1644   :  { %3818 = vmatmul.mubr.msk.f32.vlgmr.msra.gmra.mrb[30].mxu1 %vm547_vm1, %v2524_v48 }
0x170f   :  { %v3812_v50 = vpop.f32.mrb[28].mxu1 }
0x1710   :  { %v2512_v29 = vpop.f32.mrb[29].mxu1 }
0x1717   :  { %v3819_v51 = vpop.f32.mrb[30].mxu1 }
0x1718   :  { %v2613_v53 = vmul.f32 0.35355338, %v3819_v51  ;;  %v2603_v57 = vpop.f32.mrb[31].mxu1 }
0x1719   :  { %v2612_v58 = vmul.f32 0.35355338, %v2603_v57 }
0x171a   :  { %v2615_v60 = vadd.f32 %v4340_v16, %v2613_v53 }
0x171b   :  { %v2614_v61 = vadd.f32 %v4341_v21, %v2612_v58 }
0x171c   :  { %v2619_v62 = vsel %vm635_vm3, %v2615_v60, -inf }
0x171d   :  { %2620 = vmax.xlane.f32.xlu0 %v2619_v62  ;;  %v2616_v63 = vsel %vm635_vm3, %v2614_v61, -inf }
0x171e   :  { %2617 = vmax.xlane.f32.xlu1 %v2616_v63  ;;  %v3389_v63 = vld [vmem:[%s5365_s12 + $0x30] sm:$0xff] }
0x172f   :  { %4236 = vrot.lane.b32.xlu1 %v5114_v56, %s5410_s1 }
0x1733   :  { %2729 = vrot.lane.b32.xlu1 %v5172_v9, %s5411_s27 }
0x1737   :  { %2735 = vrot.lane.b32.xlu1 %v2512_v29, %s5412_s28 }
0x173b   :  { %2737 = vrot.lane.b32.xlu1 %v3812_v50, %s5412_s28 }
0x17aa   :  { %v2621_v33 = vpop.xlane.xlu0 %2620 }
0x17ab   :  { %v2623_v0 = vsub.f32 %v2615_v60, %v2621_v33  ;;  %v2618_v1 = vpop.xlane.xlu1 %2617  ;;  %v3387_v60 = vld [vmem:[%s5365_s12 + $0x20] sm:$0xff]  ;;  %v3390_v33 = vld [vmem:[%s5365_s12 + $0x38] sm:$0xff] }
0x17ac   :  { %v2622_v2 = vsub.f32 %v2614_v61, %v2618_v1  ;;  %v3388_v61 = vld [vmem:[%s5365_s12 + $0x28] sm:$0xff] }
0x17ad   :  { %v2626_v3 = vmul.f32 1.442695, %v2623_v0  ;;  %v4111_v62 = vpack.c.bf16 %v3388_v61, %v3387_v60  ;;  %v4115_v0 = vpack.c.bf16 %v3390_v33, %v3389_v63 }
0x17ae   :  { %v2624_v4 = vmul.f32 1.442695, %v2622_v2 }
0x17af   :  { %v4237_v5 = vpop.permute.xlu1 %4236  ;;  %4112 = vmatprep.subr.bf16.mxu1 %v4111_v62 }
0x17b0   :  { %4316 = vpow2.f32 %v2624_v4  ;;  %v4239_v6 = vunpack.i.h.bf16 %v4237_v5  ;;  %v4238_v7 = vunpack.i.l.bf16 %v4237_v5  ;;  %4114 = vmatpush3.bf16.msra.mxu1 %v4111_v62 }
0x17b1   :  { %4318 = vpow2.f32 %v2626_v3  ;;  %4116 = vmatprep.subr.bf16.mxu1 %v4115_v0 }
0x17b2   :  { %v4099_v26 = vpack.c.bf16 %v4239_v6, %v4238_v7 }
0x17b3   :  { %v2730_v31 = vpop.permute.xlu1 %2729 }
0x17b4   :  { %4100 = vmatprep.subr.bf16.mxu0 %v4099_v26  ;;  %v2750_v55 = vsel %vm547_vm1, %v5168_v8, %v2730_v31  ;;  %4118 = vmatpush3.bf16.msra.mxu1 %v4115_v0  ;;  %v3402_v31 = vld [vmem:[%s5367_s14 + $0x78] sm:$0xff] }
0x17b5   :  { %4102 = vmatpush3.bf16.msra.mxu0 %v4099_v26  ;;  %v3385_v26 = vld [vmem:[%s5363_s10 + $0x1] ss:$0 sm:$0xff] }
0x17b7   :  { %v2736_v44 = vpop.permute.xlu1 %2735 }
0x17ba   :  { %v4317_v56 = vpop.eup %4316 }
0x17bb   :  { %v2628_v9 = vsel %vm635_vm3, %v4317_v56, 0.0  ;;  %v4319_v13 = vpop.eup %4318  ;;  %v2738_v54 = vpop.permute.xlu1 %2737 }
0x17bc   :  { %2629 = vadd.xlane.f32.xlu0 %v2628_v9  ;;  %v2631_v14 = vsel %vm635_vm3, %v4319_v13, 0.0  ;;  %v2752_v35 = vsel %vm635_vm3, %v2750_v55, %v2738_v54  ;;  %v3386_v9 = vld [vmem:[%s5364_s11 + $0x1] ss:$0 sm:$0xff] }
0x17c0   :  { %2632 = vadd.xlane.f32.xlu0 %v2631_v14 }
0x17d6   :  { %2727 = vrot.lane.b32.xlu0 %v5174_v12, %s5411_s27  ;;  %v3376_v12 = vld [vmem:[%s5361_s8 + $0x28] sm:$0xff] }
0x17d7   :  { %v4103_v23 = vpack.c.bf16 %v3376_v12, %v3375_v20  ;;  %v3397_v12 = vld [vmem:[%s5367_s14 + $0x50] sm:$0xff] }
0x17d9   :  { %4104 = vmatprep.subr.bf16.mxu0 %v4103_v23 }
0x1849   :  { %v2630_v15 = vpop.xlane.xlu0 %2629 }
0x184a   :  { %4320 = vrcp.f32 %v2630_v15 }
0x184d   :  { %v2633_v18 = vpop.xlane.xlu0 %2632 }
0x184e   :  { %4322 = vrcp.f32 %v2633_v18 }
0x1851   :  { %v2728_v32 = vpop.permute.xlu0 %2727 }
0x1852   :  { %v2749_v47 = vsel %vm547_vm1, %v5170_v28, %v2728_v32  ;;  %v3380_v28 = vld [vmem:[%s5362_s9 + $0x1] ss:$0 sm:$0xff] }
0x1853   :  { %v2751_v49 = vsel %vm635_vm3, %v2749_v47, %v2736_v44  ;;  %v3392_v32 = vld [vmem:[%s5366_s13 + $0x1] ss:$0 sm:$0xff] }
0x1854   :  { %v4321_v16 = vpop.eup %4320 }
0x1855   :  { %v2635_v19 = vmul.f32 %v4321_v16, %v4317_v56 }
0x1857   :  { %3824 = vmatprep.mubr.msk.f32.mxu0 %vm635_vm3, %v2635_v19 }
0x1858   :  { %v4323_v21 = vpop.eup %4322 }
0x1859   :  { %v2637_v17 = vmul.f32 %v4323_v21, %v4319_v13  ;;  %v3395_v21 = vld [vmem:[%s5367_s14 + $0x40] sm:$0xff] }
0x185b   :  { %3825 = vmatmul.mubr.msk.f32.vlgmr.msra.gmra.mrb[20].mxu0 %vm635_vm3, %v2637_v17  ;;  %v3396_v17 = vld [vmem:[%s5367_s14 + $0x48] sm:$0xff] }
0x185c   :  { %4106 = vmatpush3.bf16.msra.mxu0 %v4103_v23  ;;  %v4119_v20 = vpack.c.bf16 %v3396_v17, %v3395_v21  ;;  %v4123_v23 = vpack.c.bf16 %v3398_v22, %v3397_v12 }
0x185d   :  { %4108 = vmatprep.subr.bf16.mxu0 %v4107_v25 }
0x1860   :  { %4110 = vmatpush3.bf16.msra.mxu0 %v4107_v25  ;;  %v3400_v25 = vld [vmem:[%s5367_s14 + $0x68] sm:$0xff] }
0x1861   :  { %4120 = vmatprep.subr.bf16.mxu0 %v4119_v20 }
0x192e   :  { %v3826_v27 = vpop.f32.mrb[20].mxu0 }
0x192f   :  { %2745 = vrot.lane.b32.xlu1 %v3826_v27, %s5413_s23  ;;  %v2716_v30 = vpop.f32.mrb[21].mxu0  ;;  %v4127_v27 = vpack.c.bf16 %v3400_v25, %v3399_v24  ;;  %v3404_v24 = vld [vmem:[%s5368_s15 + $0x1] ss:$0 sm:$0xff] }
0x1930   :  { %2743 = vrot.lane.b32.xlu0 %v2716_v30, %s5413_s23  ;;  %v3401_v30 = vld [vmem:[%s5367_s14 + $0x70] sm:$0xff] }
0x1931   :  { %v4131_v44 = vpack.c.bf16 %v3402_v31, %v3401_v30 }
0x19a1   :  { %v2746_v34 = vpop.permute.xlu1 %2745 }
0x19a2   :  { %v2744_v52 = vpop.permute.xlu0 %2743  ;;  %v2754_v37 = vsel %vm1385_vm4, %v2752_v35, %v2746_v34 }
0x19a3   :  { %v2753_v36 = vsel %vm1385_vm4, %v2751_v49, %v2744_v52 }
0x19a4   :  { %3835 = vmatprep.mubr.msk.f32.mxu0 %vm405_vm0, %v2753_v36 }
0x19a5   :  { %3836 = vmatmul.mubr.msk.f32.vlgmr.msra.gmra.mrb[22].mxu0 %vm405_vm0, %v2754_v37 }
0x19a6   :  { %4122 = vmatpush3.bf16.msra.mxu0 %v4119_v20 }
0x19a7   :  { %4124 = vmatprep.subr.bf16.mxu0 %v4123_v23 }
0x19aa   :  { %4126 = vmatpush3.bf16.msra.mxu0 %v4123_v23 }
0x19ab   :  { %4128 = vmatprep.subr.bf16.mxu0 %v4127_v27 }
0x19ae   :  { %4130 = vmatpush3.bf16.msra.mxu0 %v4127_v27 }
0x19af   :  { %4132 = vmatprep.subr.bf16.mxu0 %v4131_v44 }
0x19b2   :  { %4134 = vmatpush3.bf16.msra.mxu0 %v4131_v44 }
0x1a78   :  { %v3837_v38 = vpop.f32.mrb[22].mxu0 }
0x1a79   :  { %v2846_v39 = vadd.f32 %v3837_v38, %v3380_v28  ;;  %v2840_v8 = vpop.f32.mrb[23].mxu0 }
0x1a7a   :  { %v2841_v40 = vadd.f32 %v3380_v28, %v2840_v8 }
0x1a7b   :  { %v5244_v41 = vadd.f32 %v2846_v39, %v5070_v11 }
0x1a7c   :  { %v5247_v42 = vadd.f32 %v2841_v40, %v5073_v10 }
0x1a7d   :  { %v2858_v43 = vsel %vm405_vm0, %v5244_v41, 0.0 }
0x1a7e   :  { %2859 = vadd.xlane.f32.xlu1 %v2858_v43  ;;  %v2855_v45 = vsel %vm405_vm0, %v5247_v42, 0.0 }
0x1a7f   :  { %2856 = vadd.xlane.f32.xlu0 %v2855_v45 }
0x1b0b   :  { %v2860_v46 = vpop.xlane.xlu1 %2859 }
0x1b0c   :  { %v2862_v48 = vmul.f32 0.03125, %v2860_v46  ;;  %v2857_v50 = vpop.xlane.xlu0 %2856 }
0x1b0d   :  { %v2861_v29 = vmul.f32 0.03125, %v2857_v50 }
0x1b0e   :  { %v2864_v51 = vsub.f32 %v5244_v41, %v2862_v48 }
0x1b0f   :  { %v2863_v11 = vsub.f32 %v5247_v42, %v2861_v29 }
0x1b10   :  { %v2866_v57 = vmul.f32 %v2864_v51, %v2864_v51 }
0x1b11   :  { %v2865_v53 = vmul.f32 %v2863_v11, %v2863_v11 }
0x1b12   :  { %v2870_v58 = vsel %vm405_vm0, %v2866_v57, 0.0 }
0x1b13   :  { %v2867_v10 = vsel %vm405_vm0, %v2865_v53, 0.0 }
0x1b14   :  { %2868 = vadd.xlane.f32.xlu0 %v2867_v10 }
0x1b18   :  { %2871 = vadd.xlane.f32.xlu0 %v2870_v58 }
0x1ba1   :  { %v2869_v1 = vpop.xlane.xlu0 %2868 }
0x1ba2   :  { %v2873_v2 = vmul.f32 0.03125, %v2869_v1 }
0x1ba4   :  { %v2875_v3 = vadd.f32 1e-06, %v2873_v2 }
0x1ba5   :  { %v2872_v4 = vpop.xlane.xlu0 %2871 }
0x1ba6   :  { %4324 = vrsqrt.f32 %v2875_v3  ;;  %v2874_v5 = vmul.f32 0.03125, %v2872_v4 }
0x1ba8   :  { %v2876_v6 = vadd.f32 1e-06, %v2874_v5 }
0x1baa   :  { %4326 = vrsqrt.f32 %v2876_v6 }
0x1bb0   :  { %v4325_v7 = vpop.eup %4324 }
0x1bb1   :  { %v2879_v56 = vmul.f32 %v4325_v7, %v2863_v11 }
0x1bb3   :  { %v2887_v13 = vmul.f32 %v3385_v26, %v2879_v56 }
0x1bb4   :  { %v4327_v14 = vpop.eup %4326 }
0x1bb5   :  { %v2880_v15 = vmul.f32 %v4327_v14, %v2864_v51  ;;  %v2895_v18 = vadd.f32 %v3386_v9, %v2887_v13 }
0x1bb7   :  { %v2888_v16 = vmul.f32 %v3385_v26, %v2880_v15  ;;  %3846 = vmatprep.mubr.msk.f32.mxu1 %vm405_vm0, %v2895_v18 }
0x1bb9   :  { %v2896_v19 = vadd.f32 %v3386_v9, %v2888_v16 }
0x1bbb   :  { %3847 = vmatmul.mubr.msk.f32.vlgmr.msra.gmra.mrb[32].mxu1 %vm405_vm0, %v2896_v19 }
0x1c8e   :  { %v3848_v54 = vpop.f32.mrb[32].mxu1 }
0x1c8f   :  { %v2988_v47 = vadd.f32 %v3848_v54, %v3392_v32  ;;  %v2982_v34 = vpop.f32.mrb[33].mxu1 }
0x1c90   :  { %v2983_v55 = vadd.f32 %v3392_v32, %v2982_v34 }
0x1c91   :  { %v2994_v49 = vmul.f32 0.70710677, %v2988_v47  ;;  %v2992_v12 = vmul.f32 0.5, %v2988_v47 }
0x1c92   :  { %v2993_v52 = vmul.f32 0.70710677, %v2983_v55  ;;  %v2991_v17 = vmul.f32 0.5, %v2983_v55 }
0x1c93   :  { %v3000_v35 = vand.u32 2147483647, %v2994_v49  ;;  %vm2996_vm8 = vcmp.lt.f32.partialorder %v2994_v49, 0.0 }
0x1c94   :  { %v2999_v36 = vand.u32 2147483647, %v2993_v52  ;;  %vm2995_vm9 = vcmp.lt.f32.partialorder %v2993_v52, 0.0  ;;  %v2998_v14 = vsel %vm2996_vm8, -1.0, %v4380_v59 }
0x1c95   :  { %v3002_v37 = vmul.f32 0.3275911, %v3000_v35  ;;  %v3028_v8 = vsub.f32 0.0, %v3000_v35  ;;  %v2997_v16 = vsel %vm2995_vm9, -1.0, %v4380_v59 }
0x1c96   :  { %v3001_v28 = vmul.f32 0.3275911, %v2999_v36  ;;  %v3027_v40 = vsub.f32 0.0, %v2999_v36 }
0x1c97   :  { %v3004_v38 = vadd.f32 1.0, %v3002_v37  ;;  %v3030_v45 = vmul.f32 %v3028_v8, %v3000_v35  ;;  %v3191_v8 = vld [vmem:[%s5371_s18 + $0x10] sm:$0xff] }
0x1c98   :  { %v3003_v39 = vadd.f32 1.0, %v3001_v28  ;;  %v3029_v50 = vmul.f32 %v3027_v40, %v2999_v36  ;;  %v3192_v40 = vld [vmem:[%s5371_s18 + $0x18] sm:$0xff] }
0x1c99   :  { %4328 = vrcp.f32 %v3004_v38  ;;  %v3033_v11 = vmul.f32 1.442695, %v3030_v45  ;;  %v3190_v38 = vld [vmem:[%s5371_s18 + $0x8] sm:$0xff] }
0x1c9a   :  { %4330 = vrcp.f32 %v3003_v39  ;;  %v3031_v57 = vmul.f32 1.442695, %v3029_v50 }
0x1c9b   :  { %4332 = vpow2.f32 %v3033_v11 }
0x1c9c   :  { %4334 = vpow2.f32 %v3031_v57 }
0x1ca3   :  { %v4329_v43 = vpop.eup %4328 }
0x1ca4   :  { %v4331_v46 = vpop.eup %4330  ;;  %v3010_v48 = vmul.f32 1.0614054, %v4329_v43 }
0x1ca5   :  { %v3009_v29 = vmul.f32 1.0614054, %v4331_v46  ;;  %v4333_v6 = vpop.eup %4332 }
0x1ca6   :  { %v3012_v51 = vadd.f32 -1.4531521, %v3010_v48  ;;  %v4335_v26 = vpop.eup %4334 }
0x1ca7   :  { %v3011_v53 = vadd.f32 -1.4531521, %v3009_v29 }
0x1ca8   :  { %v3014_v10 = vmul.f32 %v4329_v43, %v3012_v51 }
0x1ca9   :  { %v3013_v58 = vmul.f32 %v4331_v46, %v3011_v53  ;;  %v3407_v53 = vld [vmem:[%s5369_s16] ss:$0 sm:$0xff]  ;;  %s4381_s16 = smov [#allocation2]  }
0x1caa   :  { %v3016_v60 = vadd.f32 1.4214138, %v3014_v10  ;;  %s3288_s8 = sshll.u32 %s4381_s16, 4  ;;  %s3289_s8 = int_to_ptr.vmem [resolvable:$true] %s3288_s8 }
0x1cab   :  { %v3015_v61 = vadd.f32 1.4214138, %v3013_v58  ;;  %p4347_p1 = scmp.lt.s32.totalorder %s3289_s8, %s3289_s8 }
0x1cac   :  { %v3018_v62 = vmul.f32 %v4329_v43, %v3016_v60  ;;  %v3408_v60 = vld [vmem:[%s5370_s17] ss:$0 sm:$0xff]  ;;  %s4342_s17 = scalar_lea.vmem %s3289_s8, 256 }
0x1cad   :  { %v3017_v63 = vmul.f32 %v4331_v46, %v3015_v61  ;;  %p4343_p0 = scmp.ne.s32.totalorder %s3289_s8, %s4342_s17  ;;  %p4348_p2 = scmp.lt.s32.totalorder %s4342_s17, %s4342_s17 }
0x1cae   :  { %v3020_v33 = vadd.f32 -0.28449672, %v3018_v62 }
0x1caf   :  { %v3019_v0 = vadd.f32 -0.28449672, %v3017_v63  ;;  %p4349_p3 = por %p4348_p2, %p4347_p1 }
0x1cb0   :  { %v3022_v1 = vmul.f32 %v4329_v43, %v3020_v33 }
0x1cb1   :  { %v3021_v2 = vmul.f32 %v4331_v46, %v3019_v0  ;;  %v3409_v0 = vld [vmem:[%s5372_s19] ss:$0 sm:$0xff]  ;;  %p4350_p4 = pnand %p4349_p3, %p4343_p0 }
0x1cb2   :  { %v3024_v3 = vadd.f32 0.2548296, %v3022_v1 }
0x1cb3   :  { %v3023_v4 = vadd.f32 0.2548296, %v3021_v2 }
0x1cb4   :  { %v3026_v5 = vmul.f32 %v4329_v43, %v3024_v3  ;;  %v4139_v43 = vpack.c.bf16 %v3192_v40, %v3191_v8 }
0x1cb5   :  { %v3025_v7 = vmul.f32 %v4331_v46, %v3023_v4 }
0x1cb6   :  { %v3036_v56 = vmul.f32 %v4333_v6, %v3026_v5 }
0x1cb7   :  { %v3035_v9 = vmul.f32 %v4335_v26, %v3025_v7 }
0x1cb8   :  { %v3038_v13 = vsub.f32 1.0, %v3036_v56 }
0x1cb9   :  { %v3037_v15 = vsub.f32 1.0, %v3035_v9 }
0x1cba   :  { %v3040_v18 = vmul.f32 %v3038_v13, %v2998_v14 }
0x1cbb   :  { %v3039_v19 = vmul.f32 %v3037_v15, %v2997_v16 }
0x1cbc   :  { %v3042_v21 = vadd.f32 1.0, %v3040_v18 }
0x1cbd   :  { %v3041_v20 = vadd.f32 1.0, %v3039_v19 }
0x1cbe   :  { %v3044_v23 = vmul.f32 %v3042_v21, %v2992_v12 }
0x1cbf   :  { %v3043_v22 = vmul.f32 %v3041_v20, %v2991_v17 }
0x1cc1   :  { %3865 = vmatprep.mubr.msk.f32.mxu0 %vm1687_vm7, %v3043_v22 }
0x1cc2   :  { %3866 = vmatmul.mubr.msk.f32.vlgmr.msra.gmra.mrb[24].mxu0 %vm1687_vm7, %v3044_v23 }
0x1d95   :  { %v3867_v25 = vpop.f32.mrb[24].mxu0 }
0x1d96   :  { %v3140_v27 = vadd.f32 %v3867_v25, %v3404_v24  ;;  %v3134_v30 = vpop.f32.mrb[25].mxu0 }
0x1d97   :  { %v3135_v31 = vadd.f32 %v3404_v24, %v3134_v30 }
0x1d98   :  { %v3144_v59 = vadd.f32 %v3140_v27, %v5244_v41 }
0x1d99   :  { %v3143_v44 = vadd.f32 %v3135_v31, %v5247_v42  ;;  %v3189_v42 = vld [vmem:[%s5371_s18] sm:$0xff] }
0x1d9a   :  { %v3150_v32 = vsel %vm405_vm0, %v3144_v59, 0.0  ;;  %v4135_v39 = vpack.c.bf16 %v3190_v38, %v3189_v42 }
0x1d9b   :  { %3151 = vadd.xlane.f32.xlu1 %v3150_v32  ;;  %v3147_v54 = vsel %vm405_vm0, %v3143_v44, 0.0 }
0x1d9c   :  { %3148 = vadd.xlane.f32.xlu0 %v3147_v54  ;;  %4136 = vmatprep.subr.bf16.mxu1 %v4135_v39 }
0x1d9d   :  { %4138 = vmatpush3.bf16.msra.mxu1 %v4135_v39 }
0x1d9e   :  { %4140 = vmatprep.subr.bf16.mxu1 %v4139_v43 }
0x1da1   :  { %4142 = vmatpush3.bf16.msra.mxu1 %v4139_v43 }
0x1e28   :  { %v3152_v47 = vpop.xlane.xlu1 %3151 }
0x1e29   :  { %v3154_v34 = vmul.f32 0.03125, %v3152_v47  ;;  %v3149_v55 = vpop.xlane.xlu0 %3148 }
0x1e2a   :  { %v3153_v49 = vmul.f32 0.03125, %v3149_v55 }
0x1e2b   :  { %v3156_v52 = vsub.f32 %v3144_v59, %v3154_v34 }
0x1e2c   :  { %v3155_v35 = vsub.f32 %v3143_v44, %v3153_v49 }
0x1e2d   :  { %v3158_v36 = vmul.f32 %v3156_v52, %v3156_v52 }
0x1e2e   :  { %v3157_v37 = vmul.f32 %v3155_v35, %v3155_v35 }
0x1e2f   :  { %v3162_v28 = vsel %vm405_vm0, %v3158_v36, 0.0 }
0x1e30   :  { %3163 = vadd.xlane.f32.xlu1 %v3162_v28  ;;  %v3159_v41 = vsel %vm405_vm0, %v3157_v37, 0.0 }
0x1e31   :  { %3160 = vadd.xlane.f32.xlu0 %v3159_v41 }
0x1ebd   :  { %v3164_v45 = vpop.xlane.xlu1 %3163 }
0x1ebe   :  { %v3166_v46 = vmul.f32 0.03125, %v3164_v45  ;;  %v3161_v48 = vpop.xlane.xlu0 %3160 }
0x1ebf   :  { %v3165_v50 = vmul.f32 0.03125, %v3161_v48 }
0x1ec0   :  { %v3168_v29 = vadd.f32 1e-06, %v3166_v46 }
0x1ec1   :  { %v3167_v51 = vadd.f32 1e-06, %v3165_v50 }
0x1ec2   :  { %4336 = vrsqrt.f32 %v3168_v29 }
0x1ec3   :  { %4338 = vrsqrt.f32 %v3167_v51 }
0x1ecc   :  { %v4337_v11 = vpop.eup %4336 }
0x1ecd   :  { %v4339_v10 = vpop.eup %4338  ;;  %v3172_v57 = vmul.f32 %v4337_v11, %v3156_v52 }
0x1ece   :  { %v3171_v58 = vmul.f32 %v4339_v10, %v3155_v35 }
0x1ecf   :  { %v3180_v61 = vmul.f32 %v3407_v53, %v3172_v57 }
0x1ed0   :  { %v3179_v62 = vmul.f32 %v3407_v53, %v3171_v58 }
0x1ed1   :  { %v3188_v33 = vadd.f32 %v3408_v60, %v3180_v61 }
0x1ed2   :  { %v3187_v63 = vadd.f32 %v3408_v60, %v3179_v62 }
0x1ed4   :  { %3876 = vmatprep.mubr.msk.f32.mxu1 %vm405_vm0, %v3187_v63 }
0x1ed5   :  { %3877 = vmatmul.mubr.msk.f32.vlgmr.msra.gmra.mrb[34].mxu1 %vm405_vm0, %v3188_v33 }
0x1fa8   :  { %v3878_v1 = vpop.f32.mrb[34].mxu1 }
0x1fa9   :  { %v3278_v2 = vadd.f32 %v3878_v1, %v3409_v0  ;;  %v3272_v3 = vpop.f32.mrb[35].mxu1 }
0x1faa   :  { %v3273_v4 = vadd.f32 %v3409_v0, %v3272_v3 }
0x1fab   :  { %3282 = vst [vmem:[#allocation2 + $0x8] sm:$0xff] %v3278_v2 }
0x1fac   :  { %3281 = vst [vmem:[#allocation2] sm:$0xff] %v3273_v4 }
0x1fad   :  { %4353 = shalt.err (!%p4350_p4)
}
0x1fae   :  { %s4354_s19 = scalar_lea.hbm %s5373_s20, 256 }
0x1faf   :  { %p4355_p5 = scmp.ne.s32.totalorder %s5373_s20, %s4354_s19  ;;  %p4358_p6 = scmp.lt.u32.totalorder %s4354_s19, %s5373_s20 }
0x1fb1   :  { %p4360_p7 = pnand %p4358_p6, %p4355_p5 }
0x1fb3   :  { %4363 = shalt.err (!%p4360_p7)
}
0x1fb4   :  { %s4382_s0 = smov 128  }
0x1fb5   :  { %3294 = dma.vmem_to_hbm [thread:$0]  %s3289_s8, 256, %s5373_s20, [#allocation3], %s4382_s0, %s4382_s0, %s5411_s27  }
0x1fb6   :  { %4364 = dma.done.wait [#allocation3], 256  }
0x1fb7   :  { %4365 = vsyncadd [#allocation3], 4294967040 }
0x1fb8   :  { %3298 = vsyncpa [#allocation3], 1 }

</bundles_post_ra>
